<compile_context>
chip_gen: v7x
topology: tpu7x:2x2x1
jax: 0.10.0
libtpu: 0.0.40
codegen_flags: <defaults>
</compile_context>

<pallas_src>
import functools

import jax
import jax.numpy as jnp
from jax.experimental import pallas as pl
from jax.experimental.pallas import tpu as pltpu

HIDDEN = 64   # fixed by the module definition
LANES = 128


def _lstm_cell(x, h, c, wih, whh, b):
    """One PyTorch-style LSTM cell step (reference only). Gate order: [i, f, g, o]."""
    H = h.shape[-1]
    z = x @ wih + h @ whh + b
    i = jax.nn.sigmoid(z[:, 0:H])
    f = jax.nn.sigmoid(z[:, H:2 * H])
    g = jnp.tanh(z[:, 2 * H:3 * H])
    o = jax.nn.sigmoid(z[:, 3 * H:4 * H])
    c_new = f * c + i * g
    h_new = o * jnp.tanh(c_new)
    return h_new, c_new


def _make_bilstm_kernel(T, B):
    H = HIDDEN
    G = 2 * H  # fused per-gate width: [fwd | bwd] = 128 lanes

    def kernel(xp_ref, wx_ref, wh_ref, b_ref, wfc_ref, bfc_ref, h_ref, out_ref):
        # Phase 1: one matmul covering every timestep's input projection for both
        # directions (+ fused biases).  Rows [t*B, (t+1)*B) hold [x[t] | x[T-1-t]].
        gx = (jnp.dot(xp_ref[...], wx_ref[...], preferred_element_type=jnp.float32)
              + b_ref[...])                                        # (T*B, 8H)
        wh = wh_ref[...]                                           # (2H, 8H)

        def gates(z):
            # Column layout [i | f | o | g]: one contiguous sigmoid block + one tanh.
            sg = jax.nn.sigmoid(z[:, 0:3 * G])
            i = sg[:, 0 * G:1 * G]
            f = sg[:, 1 * G:2 * G]
            o = sg[:, 2 * G:3 * G]
            g = jnp.tanh(z[:, 3 * G:4 * G])
            return i, f, o, g

        # Phase 2: fused fwd+bwd recurrence, fully unrolled straight-line code.
        # t = 0 peeled: h = c = 0, so no recurrent matmul and no f*c term.
        i, f, o, g = gates(gx[0:B, :])
        c = i * g
        h = o * jnp.tanh(c)

        for t in range(1, T):
            z = (gx[t * B:(t + 1) * B, :]
                 + jnp.dot(h, wh, preferred_element_type=jnp.float32))   # (B, 8H)
            i, f, o, g = gates(z)
            c = f * c + i * g
            h = o * jnp.tanh(c)

        # Lane-dense stores: (B, 2H) state slab + 128-lane-padded FC output.
        # wfc is (2H, A_pad) with zero rows for the forward half, so no 64-lane
        # slicing of h is needed before the epilogue matmul.
        h_ref[...] = h
        out_ref[...] = (jnp.dot(h, wfc_ref[...], preferred_element_type=jnp.float32)
                        + bfc_ref[...])

    return kernel


def pack_params(params):
    """Build fused, column-permuted weights (run ONCE, off the per-call path).

    Gate-column layout of the 8H axis: [i_f, i_b, f_f, f_b, o_f, o_b, g_f, g_b]
    (each block H wide), so every fused gate is a contiguous 2H = 128-lane slice
    and the sigmoid gates [i, f, o] form one contiguous 3*2H block.
    """
    H = HIDDEN
    D = params["wih_f"].shape[0]
    A = params["w_fc"].shape[1]
    A_pad = ((A + LANES - 1) // LANES) * LANES

    def gates(w):  # (rows, 4H) in PyTorch order [i, f, g, o] -> 4 (rows, H) blocks
        return [w[:, k * H:(k + 1) * H] for k in range(4)]

    i_f, f_f, g_f, o_f = gates(params["wih_f"])
    i_b, f_b, g_b, o_b = gates(params["wih_b"])
    zD = jnp.zeros((D, H), jnp.float32)
    wx = jnp.concatenate([
        jnp.concatenate([i_f, zD, f_f, zD, o_f, zD, g_f, zD], axis=1),  # rows 0:D  <- x[t]
        jnp.concatenate([zD, i_b, zD, f_b, zD, o_b, zD, g_b], axis=1),  # rows D:2D <- x[T-1-t]
    ], axis=0)                                                          # (2D, 8H)

    hi_f, hf_f, hg_f, ho_f = gates(params["whh_f"])
    hi_b, hf_b, hg_b, ho_b = gates(params["whh_b"])
    zH = jnp.zeros((H, H), jnp.float32)
    wh = jnp.concatenate([
        jnp.concatenate([hi_f, zH, hf_f, zH, ho_f, zH, hg_f, zH], axis=1),  # rows 0:H  <- h_fwd
        jnp.concatenate([zH, hi_b, zH, hf_b, zH, ho_b, zH, hg_b], axis=1),  # rows H:2H <- h_bwd
    ], axis=0)                                                              # (2H, 8H)

    bi_f, bf_f, bg_f, bo_f = gates(params["b_f"])
    bi_b, bf_b, bg_b, bo_b = gates(params["b_b"])
    b = jnp.concatenate([bi_f, bi_b, bf_f, bf_b, bo_f, bo_b, bg_f, bg_b], axis=1)  # (1, 8H)

    # FC weight: rows padded to 2H (zero rows for the forward half -> out = h_b @ w_fc),
    # columns padded to a 128-lane multiple so the output store is unmasked.
    wfc = jnp.zeros((2 * H, A_pad), jnp.float32).at[H:, :A].set(params["w_fc"])
    bfc = jnp.zeros((1, A_pad), jnp.float32).at[:, :A].set(params["b_fc"])

    return wx, wh, b, wfc, bfc


@functools.partial(jax.jit, static_argnames=("activity_num",))
def csi_bilstm_forward(x_bct, wx, wh, b, wfc, bfc, *, activity_num):
    """x_bct: (B, subcarrier, T) float32.  Returns (ht (2,B,64), outputs (B,A))."""
    x_tbd = jnp.transpose(x_bct, (2, 0, 1)).astype(jnp.float32)   # (T, B, D)
    T, B, D = x_tbd.shape
    H = HIDDEN
    A_pad = wfc.shape[1]

    # Pair each timestep with its time-reversed partner so a single in-kernel matmul
    # yields both directions' input projections, already time-aligned per step.
    x_pair = jnp.concatenate([x_tbd, x_tbd[::-1]], axis=-1)       # (T, B, 2D)
    x_pair = x_pair.reshape(T * B, 2 * D)                         # (T*B, 2D)

    vmem = pl.BlockSpec(memory_space=pltpu.MemorySpace.VMEM)

    h_final, out_pad = pl.pallas_call(
        _make_bilstm_kernel(T, B),
        in_specs=[vmem] * 6,
        out_specs=(vmem, vmem),
        out_shape=(
            jax.ShapeDtypeStruct((B, 2 * H), jnp.float32),   # [h_fwd | h_bwd], lane-dense
            jax.ShapeDtypeStruct((B, A_pad), jnp.float32),   # 128-lane-padded FC output
        ),
    )(x_pair, wx, wh, b, wfc, bfc)

    ht = jnp.stack([h_final[:, :H], h_final[:, H:]], axis=0)     # (2, B, H)
    outputs = out_pad[:, :activity_num]                          # (B, A)
    return ht, outputs


def reference_forward(x_bct, params):
    """Pure-JAX reference mirroring PyTorch nn.LSTM(bidirectional=True) + Linear."""
    x = jnp.transpose(x_bct, (2, 0, 1)).astype(jnp.float32)  # (T, B, D)
    T, B, D = x.shape
    H = HIDDEN
    h0 = jnp.zeros((B, H), jnp.float32)
    c0 = jnp.zeros((B, H), jnp.float32)

    def run(xs, wih, whh, b):
        def step(carry, xt):
            h, c = carry
            h, c = _lstm_cell(xt, h, c, wih, whh, b)
            return (h, c), None
        (h, _), _ = jax.lax.scan(step, (h0, c0), xs)
        return h

    h_fwd = run(x, params["wih_f"], params["whh_f"], params["b_f"])
    h_bwd = run(x[::-1], params["wih_b"], params["whh_b"], params["b_b"])
    ht = jnp.stack([h_fwd, h_bwd], axis=0)
    outputs = h_bwd @ params["w_fc"] + params["b_fc"]
    return ht, outputs


def init_params(key, subcarrier_num, activity_num):
    """Deterministic synthetic params with PyTorch LSTM/Linear shapes (transposed)."""
    H = HIDDEN
    D = subcarrier_num
    A = activity_num
    ks = jax.random.split(key, 10)
    scale = 1.0 / jnp.sqrt(jnp.float32(H))

    def u(k, shape):
        return jax.random.uniform(k, shape, jnp.float32, -scale, scale)

    # PyTorch stores weight_ih_l0 as (4H, D); we keep the transposed (D, 4H) form.
    params = {
        "wih_f": u(ks[0], (D, 4 * H)),
        "whh_f": u(ks[1], (H, 4 * H)),
        "b_f":   u(ks[2], (1, 4 * H)) + u(ks[3], (1, 4 * H)),  # b_ih + b_hh
        "wih_b": u(ks[4], (D, 4 * H)),
        "whh_b": u(ks[5], (H, 4 * H)),
        "b_b":   u(ks[6], (1, 4 * H)) + u(ks[7], (1, 4 * H)),
        "w_fc":  u(ks[8], (H, A)),
        "b_fc":  u(ks[9], (1, A)),
    }
    return params


if __name__ == "__main__":
    B, SUBCARRIER, T = 2, 16, 8
    ACTIVITY = 6

    key = jax.random.PRNGKey(0)
    k_x, k_p = jax.random.split(key)
    x = jax.random.normal(k_x, (B, SUBCARRIER, T), jnp.float32)
    params = init_params(k_p, SUBCARRIER, ACTIVITY)

    # Fuse / permute / pad the parameters ONCE, off the per-call path.
    packed = jax.block_until_ready(pack_params(params))

    ht, outputs = csi_bilstm_forward(x, *packed, activity_num=ACTIVITY)
    ht, outputs = jax.block_until_ready((ht, outputs))

    ht_ref, out_ref = reference_forward(x, params)
    assert ht.shape == (2, B, HIDDEN) and outputs.shape == (B, ACTIVITY)
    assert jnp.allclose(ht, ht_ref, atol=1e-4, rtol=1e-4)
    assert jnp.allclose(outputs, out_ref, atol=1e-4, rtol=1e-4)

    print("KERNEL_OK")
</pallas_src>

<mosaic_0001>
module attributes {stable_mosaic.version = 11 : i64} {
  func.func @kernel(%arg0: memref<16x32xf32, #tpu.memory_space<vmem>>, %arg1: memref<32x512xf32, #tpu.memory_space<vmem>>, %arg2: memref<128x512xf32, #tpu.memory_space<vmem>>, %arg3: memref<1x512xf32, #tpu.memory_space<vmem>>, %arg4: memref<128x128xf32, #tpu.memory_space<vmem>>, %arg5: memref<1x128xf32, #tpu.memory_space<vmem>>, %arg6: memref<2x128xf32, #tpu.memory_space<vmem>>, %arg7: memref<2x128xf32, #tpu.memory_space<vmem>>) attributes {dimension_semantics = [], scalar_prefetch = 0 : i64, scratch_operands = 0 : i64, tpu.core_type = #tpu.core_type<tc>} {
    %c0 = arith.constant 0 : index
    %c0_0 = arith.constant 0 : index
    %0 = vector.load %arg0[%c0, %c0_0] : memref<16x32xf32, #tpu.memory_space<vmem>>, vector<16x32xf32>
    %c0_1 = arith.constant 0 : index
    %c0_2 = arith.constant 0 : index
    %1 = vector.load %arg1[%c0_1, %c0_2] : memref<32x512xf32, #tpu.memory_space<vmem>>, vector<32x512xf32>
    %cst = arith.constant dense<0.000000e+00> : vector<16x512xf32>
    %2 = tpu.matmul %0, %1, %cst {dimension_numbers = #tpu.dot_dimension_numbers<[1], [0], [0], [1], [0, 0, 1, 1], [], []>} : vector<16x32xf32>, vector<32x512xf32>, vector<16x512xf32> -> vector<16x512xf32>
    %c0_3 = arith.constant 0 : index
    %c0_4 = arith.constant 0 : index
    %3 = vector.load %arg3[%c0_3, %c0_4] : memref<1x512xf32, #tpu.memory_space<vmem>>, vector<1x512xf32>
    %4 = vector.broadcast %3 : vector<1x512xf32> to vector<16x512xf32>
    %5 = arith.addf %2, %4 : vector<16x512xf32>
    %c0_5 = arith.constant 0 : index
    %c0_6 = arith.constant 0 : index
    %6 = vector.load %arg2[%c0_5, %c0_6] : memref<128x512xf32, #tpu.memory_space<vmem>>, vector<128x512xf32>
    %7 = vector.extract_strided_slice %5 {offsets = [0, 0], sizes = [2, 512], strides = [1, 1]} : vector<16x512xf32> to vector<2x512xf32>
    %8 = vector.extract_strided_slice %7 {offsets = [0, 0], sizes = [2, 384], strides = [1, 1]} : vector<2x512xf32> to vector<2x384xf32>
    %9 = arith.negf %8 : vector<2x384xf32>
    %10 = math.exp %9 : vector<2x384xf32>
    %cst_7 = arith.constant 1.000000e+00 : f32
    %11 = vector.broadcast %cst_7 : f32 to vector<2x384xf32>
    %12 = arith.addf %11, %10 : vector<2x384xf32>
    %13 = arith.divf %11, %12 : vector<2x384xf32>
    %14 = vector.extract_strided_slice %13 {offsets = [0, 0], sizes = [2, 128], strides = [1, 1]} : vector<2x384xf32> to vector<2x128xf32>
    %15 = vector.extract_strided_slice %13 {offsets = [0, 256], sizes = [2, 128], strides = [1, 1]} : vector<2x384xf32> to vector<2x128xf32>
    %16 = vector.extract_strided_slice %7 {offsets = [0, 384], sizes = [2, 128], strides = [1, 1]} : vector<2x512xf32> to vector<2x128xf32>
    %17 = math.tanh %16 : vector<2x128xf32>
    %18 = arith.mulf %14, %17 : vector<2x128xf32>
    %19 = math.tanh %18 : vector<2x128xf32>
    %20 = arith.mulf %15, %19 : vector<2x128xf32>
    %21 = vector.extract_strided_slice %5 {offsets = [2, 0], sizes = [2, 512], strides = [1, 1]} : vector<16x512xf32> to vector<2x512xf32>
    %cst_8 = arith.constant dense<0.000000e+00> : vector<2x512xf32>
    %22 = tpu.matmul %20, %6, %cst_8 {dimension_numbers = #tpu.dot_dimension_numbers<[1], [0], [0], [1], [0, 0, 1, 1], [], []>} : vector<2x128xf32>, vector<128x512xf32>, vector<2x512xf32> -> vector<2x512xf32>
    %23 = arith.addf %21, %22 : vector<2x512xf32>
    %24 = vector.extract_strided_slice %23 {offsets = [0, 0], sizes = [2, 384], strides = [1, 1]} : vector<2x512xf32> to vector<2x384xf32>
    %25 = arith.negf %24 : vector<2x384xf32>
    %26 = math.exp %25 : vector<2x384xf32>
    %cst_9 = arith.constant 1.000000e+00 : f32
    %27 = vector.broadcast %cst_9 : f32 to vector<2x384xf32>
    %28 = arith.addf %27, %26 : vector<2x384xf32>
    %29 = arith.divf %27, %28 : vector<2x384xf32>
    %30 = vector.extract_strided_slice %29 {offsets = [0, 0], sizes = [2, 128], strides = [1, 1]} : vector<2x384xf32> to vector<2x128xf32>
    %31 = vector.extract_strided_slice %29 {offsets = [0, 128], sizes = [2, 128], strides = [1, 1]} : vector<2x384xf32> to vector<2x128xf32>
    %32 = vector.extract_strided_slice %29 {offsets = [0, 256], sizes = [2, 128], strides = [1, 1]} : vector<2x384xf32> to vector<2x128xf32>
    %33 = vector.extract_strided_slice %23 {offsets = [0, 384], sizes = [2, 128], strides = [1, 1]} : vector<2x512xf32> to vector<2x128xf32>
    %34 = math.tanh %33 : vector<2x128xf32>
    %35 = arith.mulf %31, %18 : vector<2x128xf32>
    %36 = arith.mulf %30, %34 : vector<2x128xf32>
    %37 = arith.addf %35, %36 : vector<2x128xf32>
    %38 = math.tanh %37 : vector<2x128xf32>
    %39 = arith.mulf %32, %38 : vector<2x128xf32>
    %40 = vector.extract_strided_slice %5 {offsets = [4, 0], sizes = [2, 512], strides = [1, 1]} : vector<16x512xf32> to vector<2x512xf32>
    %cst_10 = arith.constant dense<0.000000e+00> : vector<2x512xf32>
    %41 = tpu.matmul %39, %6, %cst_10 {dimension_numbers = #tpu.dot_dimension_numbers<[1], [0], [0], [1], [0, 0, 1, 1], [], []>} : vector<2x128xf32>, vector<128x512xf32>, vector<2x512xf32> -> vector<2x512xf32>
    %42 = arith.addf %40, %41 : vector<2x512xf32>
    %43 = vector.extract_strided_slice %42 {offsets = [0, 0], sizes = [2, 384], strides = [1, 1]} : vector<2x512xf32> to vector<2x384xf32>
    %44 = arith.negf %43 : vector<2x384xf32>
    %45 = math.exp %44 : vector<2x384xf32>
    %cst_11 = arith.constant 1.000000e+00 : f32
    %46 = vector.broadcast %cst_11 : f32 to vector<2x384xf32>
    %47 = arith.addf %46, %45 : vector<2x384xf32>
    %48 = arith.divf %46, %47 : vector<2x384xf32>
    %49 = vector.extract_strided_slice %48 {offsets = [0, 0], sizes = [2, 128], strides = [1, 1]} : vector<2x384xf32> to vector<2x128xf32>
    %50 = vector.extract_strided_slice %48 {offsets = [0, 128], sizes = [2, 128], strides = [1, 1]} : vector<2x384xf32> to vector<2x128xf32>
    %51 = vector.extract_strided_slice %48 {offsets = [0, 256], sizes = [2, 128], strides = [1, 1]} : vector<2x384xf32> to vector<2x128xf32>
    %52 = vector.extract_strided_slice %42 {offsets = [0, 384], sizes = [2, 128], strides = [1, 1]} : vector<2x512xf32> to vector<2x128xf32>
    %53 = math.tanh %52 : vector<2x128xf32>
    %54 = arith.mulf %50, %37 : vector<2x128xf32>
    %55 = arith.mulf %49, %53 : vector<2x128xf32>
    %56 = arith.addf %54, %55 : vector<2x128xf32>
    %57 = math.tanh %56 : vector<2x128xf32>
    %58 = arith.mulf %51, %57 : vector<2x128xf32>
    %59 = vector.extract_strided_slice %5 {offsets = [6, 0], sizes = [2, 512], strides = [1, 1]} : vector<16x512xf32> to vector<2x512xf32>
    %cst_12 = arith.constant dense<0.000000e+00> : vector<2x512xf32>
    %60 = tpu.matmul %58, %6, %cst_12 {dimension_numbers = #tpu.dot_dimension_numbers<[1], [0], [0], [1], [0, 0, 1, 1], [], []>} : vector<2x128xf32>, vector<128x512xf32>, vector<2x512xf32> -> vector<2x512xf32>
    %61 = arith.addf %59, %60 : vector<2x512xf32>
    %62 = vector.extract_strided_slice %61 {offsets = [0, 0], sizes = [2, 384], strides = [1, 1]} : vector<2x512xf32> to vector<2x384xf32>
    %63 = arith.negf %62 : vector<2x384xf32>
    %64 = math.exp %63 : vector<2x384xf32>
    %cst_13 = arith.constant 1.000000e+00 : f32
    %65 = vector.broadcast %cst_13 : f32 to vector<2x384xf32>
    %66 = arith.addf %65, %64 : vector<2x384xf32>
    %67 = arith.divf %65, %66 : vector<2x384xf32>
    %68 = vector.extract_strided_slice %67 {offsets = [0, 0], sizes = [2, 128], strides = [1, 1]} : vector<2x384xf32> to vector<2x128xf32>
    %69 = vector.extract_strided_slice %67 {offsets = [0, 128], sizes = [2, 128], strides = [1, 1]} : vector<2x384xf32> to vector<2x128xf32>
    %70 = vector.extract_strided_slice %67 {offsets = [0, 256], sizes = [2, 128], strides = [1, 1]} : vector<2x384xf32> to vector<2x128xf32>
    %71 = vector.extract_strided_slice %61 {offsets = [0, 384], sizes = [2, 128], strides = [1, 1]} : vector<2x512xf32> to vector<2x128xf32>
    %72 = math.tanh %71 : vector<2x128xf32>
    %73 = arith.mulf %69, %56 : vector<2x128xf32>
    %74 = arith.mulf %68, %72 : vector<2x128xf32>
    %75 = arith.addf %73, %74 : vector<2x128xf32>
    %76 = math.tanh %75 : vector<2x128xf32>
    %77 = arith.mulf %70, %76 : vector<2x128xf32>
    %78 = vector.extract_strided_slice %5 {offsets = [8, 0], sizes = [2, 512], strides = [1, 1]} : vector<16x512xf32> to vector<2x512xf32>
    %cst_14 = arith.constant dense<0.000000e+00> : vector<2x512xf32>
    %79 = tpu.matmul %77, %6, %cst_14 {dimension_numbers = #tpu.dot_dimension_numbers<[1], [0], [0], [1], [0, 0, 1, 1], [], []>} : vector<2x128xf32>, vector<128x512xf32>, vector<2x512xf32> -> vector<2x512xf32>
    %80 = arith.addf %78, %79 : vector<2x512xf32>
    %81 = vector.extract_strided_slice %80 {offsets = [0, 0], sizes = [2, 384], strides = [1, 1]} : vector<2x512xf32> to vector<2x384xf32>
    %82 = arith.negf %81 : vector<2x384xf32>
    %83 = math.exp %82 : vector<2x384xf32>
    %cst_15 = arith.constant 1.000000e+00 : f32
    %84 = vector.broadcast %cst_15 : f32 to vector<2x384xf32>
    %85 = arith.addf %84, %83 : vector<2x384xf32>
    %86 = arith.divf %84, %85 : vector<2x384xf32>
    %87 = vector.extract_strided_slice %86 {offsets = [0, 0], sizes = [2, 128], strides = [1, 1]} : vector<2x384xf32> to vector<2x128xf32>
    %88 = vector.extract_strided_slice %86 {offsets = [0, 128], sizes = [2, 128], strides = [1, 1]} : vector<2x384xf32> to vector<2x128xf32>
    %89 = vector.extract_strided_slice %86 {offsets = [0, 256], sizes = [2, 128], strides = [1, 1]} : vector<2x384xf32> to vector<2x128xf32>
    %90 = vector.extract_strided_slice %80 {offsets = [0, 384], sizes = [2, 128], strides = [1, 1]} : vector<2x512xf32> to vector<2x128xf32>
    %91 = math.tanh %90 : vector<2x128xf32>
    %92 = arith.mulf %88, %75 : vector<2x128xf32>
    %93 = arith.mulf %87, %91 : vector<2x128xf32>
    %94 = arith.addf %92, %93 : vector<2x128xf32>
    %95 = math.tanh %94 : vector<2x128xf32>
    %96 = arith.mulf %89, %95 : vector<2x128xf32>
    %97 = vector.extract_strided_slice %5 {offsets = [10, 0], sizes = [2, 512], strides = [1, 1]} : vector<16x512xf32> to vector<2x512xf32>
    %cst_16 = arith.constant dense<0.000000e+00> : vector<2x512xf32>
    %98 = tpu.matmul %96, %6, %cst_16 {dimension_numbers = #tpu.dot_dimension_numbers<[1], [0], [0], [1], [0, 0, 1, 1], [], []>} : vector<2x128xf32>, vector<128x512xf32>, vector<2x512xf32> -> vector<2x512xf32>
    %99 = arith.addf %97, %98 : vector<2x512xf32>
    %100 = vector.extract_strided_slice %99 {offsets = [0, 0], sizes = [2, 384], strides = [1, 1]} : vector<2x512xf32> to vector<2x384xf32>
    %101 = arith.negf %100 : vector<2x384xf32>
    %102 = math.exp %101 : vector<2x384xf32>
    %cst_17 = arith.constant 1.000000e+00 : f32
    %103 = vector.broadcast %cst_17 : f32 to vector<2x384xf32>
    %104 = arith.addf %103, %102 : vector<2x384xf32>
    %105 = arith.divf %103, %104 : vector<2x384xf32>
    %106 = vector.extract_strided_slice %105 {offsets = [0, 0], sizes = [2, 128], strides = [1, 1]} : vector<2x384xf32> to vector<2x128xf32>
    %107 = vector.extract_strided_slice %105 {offsets = [0, 128], sizes = [2, 128], strides = [1, 1]} : vector<2x384xf32> to vector<2x128xf32>
    %108 = vector.extract_strided_slice %105 {offsets = [0, 256], sizes = [2, 128], strides = [1, 1]} : vector<2x384xf32> to vector<2x128xf32>
    %109 = vector.extract_strided_slice %99 {offsets = [0, 384], sizes = [2, 128], strides = [1, 1]} : vector<2x512xf32> to vector<2x128xf32>
    %110 = math.tanh %109 : vector<2x128xf32>
    %111 = arith.mulf %107, %94 : vector<2x128xf32>
    %112 = arith.mulf %106, %110 : vector<2x128xf32>
    %113 = arith.addf %111, %112 : vector<2x128xf32>
    %114 = math.tanh %113 : vector<2x128xf32>
    %115 = arith.mulf %108, %114 : vector<2x128xf32>
    %116 = vector.extract_strided_slice %5 {offsets = [12, 0], sizes = [2, 512], strides = [1, 1]} : vector<16x512xf32> to vector<2x512xf32>
    %cst_18 = arith.constant dense<0.000000e+00> : vector<2x512xf32>
    %117 = tpu.matmul %115, %6, %cst_18 {dimension_numbers = #tpu.dot_dimension_numbers<[1], [0], [0], [1], [0, 0, 1, 1], [], []>} : vector<2x128xf32>, vector<128x512xf32>, vector<2x512xf32> -> vector<2x512xf32>
    %118 = arith.addf %116, %117 : vector<2x512xf32>
    %119 = vector.extract_strided_slice %118 {offsets = [0, 0], sizes = [2, 384], strides = [1, 1]} : vector<2x512xf32> to vector<2x384xf32>
    %120 = arith.negf %119 : vector<2x384xf32>
    %121 = math.exp %120 : vector<2x384xf32>
    %cst_19 = arith.constant 1.000000e+00 : f32
    %122 = vector.broadcast %cst_19 : f32 to vector<2x384xf32>
    %123 = arith.addf %122, %121 : vector<2x384xf32>
    %124 = arith.divf %122, %123 : vector<2x384xf32>
    %125 = vector.extract_strided_slice %124 {offsets = [0, 0], sizes = [2, 128], strides = [1, 1]} : vector<2x384xf32> to vector<2x128xf32>
    %126 = vector.extract_strided_slice %124 {offsets = [0, 128], sizes = [2, 128], strides = [1, 1]} : vector<2x384xf32> to vector<2x128xf32>
    %127 = vector.extract_strided_slice %124 {offsets = [0, 256], sizes = [2, 128], strides = [1, 1]} : vector<2x384xf32> to vector<2x128xf32>
    %128 = vector.extract_strided_slice %118 {offsets = [0, 384], sizes = [2, 128], strides = [1, 1]} : vector<2x512xf32> to vector<2x128xf32>
    %129 = math.tanh %128 : vector<2x128xf32>
    %130 = arith.mulf %126, %113 : vector<2x128xf32>
    %131 = arith.mulf %125, %129 : vector<2x128xf32>
    %132 = arith.addf %130, %131 : vector<2x128xf32>
    %133 = math.tanh %132 : vector<2x128xf32>
    %134 = arith.mulf %127, %133 : vector<2x128xf32>
    %135 = vector.extract_strided_slice %5 {offsets = [14, 0], sizes = [2, 512], strides = [1, 1]} : vector<16x512xf32> to vector<2x512xf32>
    %cst_20 = arith.constant dense<0.000000e+00> : vector<2x512xf32>
    %136 = tpu.matmul %134, %6, %cst_20 {dimension_numbers = #tpu.dot_dimension_numbers<[1], [0], [0], [1], [0, 0, 1, 1], [], []>} : vector<2x128xf32>, vector<128x512xf32>, vector<2x512xf32> -> vector<2x512xf32>
    %137 = arith.addf %135, %136 : vector<2x512xf32>
    %138 = vector.extract_strided_slice %137 {offsets = [0, 0], sizes = [2, 384], strides = [1, 1]} : vector<2x512xf32> to vector<2x384xf32>
    %139 = arith.negf %138 : vector<2x384xf32>
    %140 = math.exp %139 : vector<2x384xf32>
    %cst_21 = arith.constant 1.000000e+00 : f32
    %141 = vector.broadcast %cst_21 : f32 to vector<2x384xf32>
    %142 = arith.addf %141, %140 : vector<2x384xf32>
    %143 = arith.divf %141, %142 : vector<2x384xf32>
    %144 = vector.extract_strided_slice %143 {offsets = [0, 0], sizes = [2, 128], strides = [1, 1]} : vector<2x384xf32> to vector<2x128xf32>
    %145 = vector.extract_strided_slice %143 {offsets = [0, 128], sizes = [2, 128], strides = [1, 1]} : vector<2x384xf32> to vector<2x128xf32>
    %146 = vector.extract_strided_slice %143 {offsets = [0, 256], sizes = [2, 128], strides = [1, 1]} : vector<2x384xf32> to vector<2x128xf32>
    %147 = vector.extract_strided_slice %137 {offsets = [0, 384], sizes = [2, 128], strides = [1, 1]} : vector<2x512xf32> to vector<2x128xf32>
    %148 = math.tanh %147 : vector<2x128xf32>
    %149 = arith.mulf %145, %132 : vector<2x128xf32>
    %150 = arith.mulf %144, %148 : vector<2x128xf32>
    %151 = arith.addf %149, %150 : vector<2x128xf32>
    %152 = math.tanh %151 : vector<2x128xf32>
    %153 = arith.mulf %146, %152 : vector<2x128xf32>
    %c0_22 = arith.constant 0 : index
    %c0_23 = arith.constant 0 : index
    %154 = vector.load %arg6[%c0_22, %c0_23] : memref<2x128xf32, #tpu.memory_space<vmem>>, vector<2x128xf32>
    tpu.vector_store %arg6[%c0_22, %c0_23], %153 {strides = array<i32>} : memref<2x128xf32, #tpu.memory_space<vmem>>, vector<2x128xf32>,
    %c0_24 = arith.constant 0 : index
    %c0_25 = arith.constant 0 : index
    %155 = vector.load %arg4[%c0_24, %c0_25] : memref<128x128xf32, #tpu.memory_space<vmem>>, vector<128x128xf32>
    %cst_26 = arith.constant dense<0.000000e+00> : vector<2x128xf32>
    %156 = tpu.matmul %153, %155, %cst_26 {dimension_numbers = #tpu.dot_dimension_numbers<[1], [0], [0], [1], [0, 0, 1, 1], [], []>} : vector<2x128xf32>, vector<128x128xf32>, vector<2x128xf32> -> vector<2x128xf32>
    %c0_27 = arith.constant 0 : index
    %c0_28 = arith.constant 0 : index
    %157 = vector.load %arg5[%c0_27, %c0_28] : memref<1x128xf32, #tpu.memory_space<vmem>>, vector<1x128xf32>
    %158 = vector.broadcast %157 : vector<1x128xf32> to vector<2x128xf32>
    %159 = arith.addf %156, %158 : vector<2x128xf32>
    %c0_29 = arith.constant 0 : index
    %c0_30 = arith.constant 0 : index
    %160 = vector.load %arg7[%c0_29, %c0_30] : memref<2x128xf32, #tpu.memory_space<vmem>>, vector<2x128xf32>
    tpu.vector_store %arg7[%c0_29, %c0_30], %159 {strides = array<i32>} : memref<2x128xf32, #tpu.memory_space<vmem>>, vector<2x128xf32>,
    return
  }
}

</mosaic_0001>

<bundles_post_ra>
// kernel: csi_bilstm_forward.1
= control target key start
LH: loop header
LB: loop body
LE: loop exit
PB: predicated region body
PF: predicated region fallthrough
CT: control target
= control target key end

     0   :  { %13 = vsyncpa [#allocation3], 0  ;;  %s3063_s0 = inlined_call_operand.vmem [shape: f32[16,32], index: 0, kind: input, shape index: {}]   ;;  %s3064_s1 = inlined_call_operand.hbm [shape: f32[32,512], index: 1, kind: input, shape index: {}]   ;;  %s3065_s2 = inlined_call_operand.hbm [shape: f32[128,512], index: 2, kind: input, shape index: {}]   ;;  %s3066_s3 = inlined_call_operand.vmem [shape: f32[1,512], index: 3, kind: input, shape index: {}]   ;;  %s3067_s4 = inlined_call_operand.vmem [shape: f32[128,128], index: 4, kind: input, shape index: {}]   ;;  %s3068_s5 = inlined_call_operand.vmem [shape: f32[1,128], index: 5, kind: input, shape index: {}]   ;;  %s3069_s6 = inlined_call_operand.vmem [shape: f32[2,128], index: 6, kind: output, shape index: {0}]   ;;  %s3070_s7 = inlined_call_operand.hbm [shape: f32[2,128], index: 7, kind: output, shape index: {1}]  }
   0x1   :  { %14 = vsyncpa [#allocation6], 0 }
   0x2   :  { %15 = vsyncpa [#allocation4], 0  ;;  %s2523_s24 = smov [#allocation2]   ;;  %s2451_s28 = scalar_lea.hbm %s3064_s1, 2048 }
   0x3   :  { %s23_s25 = sshll.u32 %s2523_s24, 4  ;;  %p2452_p0 = scmp.ne.s32.totalorder %s3064_s1, %s2451_s28  ;;  %s24_s25 = int_to_ptr.vmem [resolvable:$true] %s23_s25 }
   0x4   :  { %p2455_p1 = scmp.lt.u32.totalorder %s2451_s28, %s3064_s1 }
   0x6   :  { %p2457_p2 = pnand %p2455_p1, %p2452_p0 }
   0x8   :  { %2460 = shalt.err (!%p2457_p2)
}
   0x9   :  { %s2461_s10 = scalar_lea.vmem %s24_s25, 2048  ;;  %p2466_p4 = scmp.lt.s32.totalorder %s24_s25, %s24_s25 }
   0xa   :  { %p2462_p3 = scmp.ne.s32.totalorder %s24_s25, %s2461_s10  ;;  %p2467_p5 = scmp.lt.s32.totalorder %s2461_s10, %s2461_s10 }
   0xc   :  { %p2468_p6 = por %p2467_p5, %p2466_p4 }
   0xe   :  { %p2469_p7 = pnand %p2468_p6, %p2462_p3 }
  0x10   :  { %2472 = shalt.err (!%p2469_p7)
}
  0x11   :  { %s2524_s11 = smov 512   ;;  %s2525_s12 = smov 32  }
  0x12   :  { %29 = dma.hbm_to_vmem [thread:$0]  %s3064_s1, 2048, %s24_s25, [#allocation3], %s2524_s11, %s2524_s11, %s2525_s12  }
  0x13   :  { %s2526_s15 = smov [#allocation5]   ;;  %s2473_s19 = scalar_lea.hbm %s3065_s2, 8192 }
  0x14   :  { %s35_s16 = sshll.u32 %s2526_s15, 4  ;;  %p2474_p8 = scmp.ne.s32.totalorder %s3065_s2, %s2473_s19  ;;  %s36_s16 = int_to_ptr.vmem [resolvable:$true] %s35_s16 }
  0x15   :  { %p2477_p9 = scmp.lt.u32.totalorder %s2473_s19, %s3065_s2 }
  0x17   :  { %p2479_p10 = pnand %p2477_p9, %p2474_p8 }
  0x19   :  { %2482 = shalt.err (!%p2479_p10)
}
  0x1a   :  { %s2483_s24 = scalar_lea.vmem %s36_s16, 8192  ;;  %p2488_p12 = scmp.lt.s32.totalorder %s36_s16, %s36_s16 }
  0x1b   :  { %p2484_p11 = scmp.ne.s32.totalorder %s36_s16, %s2483_s24  ;;  %p2489_p13 = scmp.lt.s32.totalorder %s2483_s24, %s2483_s24 }
  0x1d   :  { %p2490_p0 = por %p2489_p13, %p2488_p12 }
  0x1f   :  { %p2491_p1 = pnand %p2490_p0, %p2484_p11 }
  0x21   :  { %2494 = shalt.err (!%p2491_p1)
}
  0x22   :  { %41 = dma.hbm_to_vmem [thread:$0]  %s3065_s2, 8192, %s36_s16, [#allocation6], %s2524_s11, %s2524_s11, %s2525_s12  }
  0x23   :  { %2517 = dma.done.wait [#allocation3], 2048  }
  0x24   :  { %2518 = vsyncadd [#allocation3], 4294965248 }
  0x25   :  { %2519 = dma.done.wait [#allocation6], 8192  }
  0x26   :  { %2520 = vsyncadd [#allocation6], 4294959104  ;;  %v2527_v0 = vmov 0.0   ;;  %v57_v1 = vld [vmem:[#allocation2 + $0x8] sm:$0xff]  ;;  %v56_v3 = vld [vmem:[#allocation2] sm:$0xff]  ;;  %vm94_vm0 = vcmask 261120  }
  0x27   :  { %165 = vmatprep.mubr.f32.mxu1 %v2527_v0  ;;  %399 = vmatprep.mubr.f32.mxu0 %v2527_v0  ;;  %v61_v2 = vld [vmem:[#allocation2 + $0x28] sm:$0xff]  ;;  %v60_v5 = vld [vmem:[#allocation2 + $0x20] sm:$0xff]  ;;  %v59_v12 = vld [vmem:[#allocation2 + $0x18] sm:$0xff]  ;;  %vm2529_vm1 = vmmov 0   ;;  %s2530_s14 = smov [#allocation7]  }
  0x28   :  { %v1831_v4 = vpack.c.bf16 %v61_v2, %v57_v1  ;;  %v65_v6 = vld [vmem:[#allocation2 + $0x48] sm:$0xff]  ;;  %v1833_v8 = vpack.c.bf16 %v60_v5, %v56_v3  ;;  %v64_v10 = vld [vmem:[#allocation2 + $0x40] sm:$0xff]  ;;  %v63_v13 = vld [vmem:[#allocation2 + $0x38] sm:$0xff]  ;;  %s1739_s15 = sshll.u32 %s2530_s14, 4  ;;  %s1740_s15 = int_to_ptr.vmem [resolvable:$true] %s1739_s15 }
  0x29   :  { %v69_v7 = vld [vmem:[#allocation2 + $0x68] sm:$0xff]  ;;  %v68_v11 = vld [vmem:[#allocation2 + $0x60] sm:$0xff]  ;;  %v1839_v15 = vpack.c.bf16 %v63_v13, %v59_v12  ;;  %v58_v16 = vld [vmem:[#allocation2 + $0x10] sm:$0xff]  ;;  %s2495_s16 = scalar_lea.vmem %s1740_s15, 32  ;;  %p2500_p3 = scmp.lt.s32.totalorder %s1740_s15, %s1740_s15 }
  0x2a   :  { %v1835_v9 = vpack.c.bf16 %v69_v7, %v65_v6  ;;  %1832 = vmatprep.subr.bf16.mxu1 %v1831_v4  ;;  %v1837_v14 = vpack.c.bf16 %v68_v11, %v64_v10  ;;  %v62_v17 = vld [vmem:[#allocation2 + $0x30] sm:$0xff]  ;;  %v67_v18 = vld [vmem:[#allocation2 + $0x58] sm:$0xff]  ;;  %v54_v20 = vld [vmem:[%s3063_s0] sm:$0xff]  ;;  %p2496_p2 = scmp.ne.s32.totalorder %s1740_s15, %s2495_s16  ;;  %p2501_p4 = scmp.lt.s32.totalorder %s2495_s16, %s2495_s16 }
  0x2b   :  { %1834 = vmatpush1.bf16.msra.mxu1 %v1833_v8  ;;  %v71_v19 = vld [vmem:[#allocation2 + $0x78] sm:$0xff]  ;;  %v1841_v21 = vpack.c.bf16 %v62_v17, %v58_v16  ;;  %v66_v23 = vld [vmem:[#allocation2 + $0x50] sm:$0xff]  ;;  %v55_v25 = vld [vmem:[%s3063_s0 + $0x8] sm:$0xff] }
  0x2c   :  { %1836 = vmatprep.subr.bf16.mxu1 %v1835_v9  ;;  %v1843_v22 = vpack.c.bf16 %v71_v19, %v67_v18  ;;  %v70_v24 = vld [vmem:[#allocation2 + $0x70] sm:$0xff]  ;;  %v256_v27 = vld [vmem:[#allocation5 + $0x8] sm:$0xff]  ;;  %v258_v29 = vld [vmem:[#allocation5 + $0x18] sm:$0xff]  ;;  %p2502_p5 = por %p2501_p4, %p2500_p3 }
  0x2d   :  { %v1845_v26 = vpack.c.bf16 %v70_v24, %v66_v23  ;;  %v260_v28 = vld [vmem:[#allocation5 + $0x28] sm:$0xff]  ;;  %v262_v31 = vld [vmem:[#allocation5 + $0x38] sm:$0xff]  ;;  %v255_v32 = vld [vmem:[#allocation5] sm:$0xff] }
  0x2e   :  { %v2611_v30 = vpack.c.bf16 %v260_v28, %v256_v27  ;;  %v259_v33 = vld [vmem:[#allocation5 + $0x20] sm:$0xff]  ;;  %v2613_v34 = vpack.c.bf16 %v262_v31, %v258_v29  ;;  %v257_v36 = vld [vmem:[#allocation5 + $0x10] sm:$0xff]  ;;  %v264_v39 = vld [vmem:[#allocation5 + $0x48] sm:$0xff]  ;;  %p2503_p6 = pnand %p2502_p5, %p2496_p2 }
  0x2f   :  { %1838 = vmatpush1.bf16.msra.mxu1 %v1837_v14  ;;  %v2615_v35 = vpack.c.bf16 %v259_v33, %v255_v32  ;;  %v261_v37 = vld [vmem:[#allocation5 + $0x30] sm:$0xff]  ;;  %v268_v40 = vld [vmem:[#allocation5 + $0x68] sm:$0xff]  ;;  %v266_v41 = vld [vmem:[#allocation5 + $0x58] sm:$0xff] }
  0x30   :  { %1840 = vmatprep.subr.bf16.mxu1 %v1839_v15  ;;  %1848 = vmatprep.subr.bf16.mxu0 %v2611_v30  ;;  %v2618_v38 = vpack.c.bf16 %v261_v37, %v257_v36  ;;  %v2623_v42 = vpack.c.bf16 %v268_v40, %v264_v39  ;;  %v270_v43 = vld [vmem:[#allocation5 + $0x78] sm:$0xff]  ;;  %v263_v44 = vld [vmem:[#allocation5 + $0x40] sm:$0xff]  ;;  %v265_v48 = vld [vmem:[#allocation5 + $0x50] sm:$0xff] }
  0x31   :  { %1850 = vmatpush1.bf16.msra.mxu0 %v2615_v35  ;;  %v267_v45 = vld [vmem:[#allocation5 + $0x60] sm:$0xff]  ;;  %v2625_v46 = vpack.c.bf16 %v270_v43, %v266_v41  ;;  %v269_v49 = vld [vmem:[#allocation5 + $0x70] sm:$0xff]  ;;  %v272_v51 = vld [vmem:[#allocation5 + $0x88] sm:$0xff] }
  0x32   :  { %1751 = vmatmul.mubr.msk.f32.vlgmr.msra.gmra.mrb[0].mxu1 %vm94_vm0, %v54_v20  ;;  %v2627_v47 = vpack.c.bf16 %v267_v45, %v263_v44  ;;  %1852 = vmatprep.subr.bf16.mxu0 %v2623_v42  ;;  %v2630_v50 = vpack.c.bf16 %v269_v49, %v265_v48  ;;  %v276_v52 = vld [vmem:[#allocation5 + $0xa8] sm:$0xff]  ;;  %v274_v53 = vld [vmem:[#allocation5 + $0x98] sm:$0xff]  ;;  %v271_v56 = vld [vmem:[#allocation5 + $0x80] sm:$0xff] }
  0x33   :  { %1842 = vmatpush1.bf16.msra.mxu1 %v1841_v21  ;;  %171 = vmatprep.mubr.f32.mxu1 %v2527_v0  ;;  %v2635_v54 = vpack.c.bf16 %v276_v52, %v272_v51  ;;  %v278_v55 = vld [vmem:[#allocation5 + $0xb8] sm:$0xff]  ;;  %v275_v57 = vld [vmem:[#allocation5 + $0xa0] sm:$0xff]  ;;  %v273_v60 = vld [vmem:[#allocation5 + $0x90] sm:$0xff] }
  0x34   :  { %1844 = vmatprep.subr.bf16.mxu1 %v1843_v22  ;;  %v2637_v58 = vpack.c.bf16 %v278_v55, %v274_v53  ;;  %v2639_v59 = vpack.c.bf16 %v275_v57, %v271_v56  ;;  %v277_v61 = vld [vmem:[#allocation5 + $0xb0] sm:$0xff]  ;;  %v280_v63 = vld [vmem:[#allocation5 + $0xc8] sm:$0xff]  ;;  %v282_v2 = vld [vmem:[#allocation5 + $0xd8] sm:$0xff] }
  0x35   :  { %1854 = vmatpush1.bf16.msra.mxu0 %v2627_v47  ;;  %v2642_v62 = vpack.c.bf16 %v277_v61, %v273_v60  ;;  %v284_v1 = vld [vmem:[#allocation5 + $0xe8] sm:$0xff]  ;;  %v286_v4 = vld [vmem:[#allocation5 + $0xf8] sm:$0xff]  ;;  %v279_v5 = vld [vmem:[#allocation5 + $0xc0] sm:$0xff] }
  0x36   :  { %1752 = vmatmul.mubr.msk.f32.gmra.mrb[2].mxu1 %vm94_vm0, %v55_v25  ;;  %1856 = vmatprep.subr.bf16.mxu0 %v2635_v54  ;;  %v2647_v3 = vpack.c.bf16 %v284_v1, %v280_v63  ;;  %v283_v6 = vld [vmem:[#allocation5 + $0xe0] sm:$0xff]  ;;  %v2649_v7 = vpack.c.bf16 %v286_v4, %v282_v2  ;;  %v281_v9 = vld [vmem:[#allocation5 + $0xd0] sm:$0xff]  ;;  %v288_v12 = vld [vmem:[#allocation5 + $0x108] sm:$0xff] }
  0x37   :  { %1846 = vmatpush1.bf16.msra.mxu1 %v1845_v26  ;;  %242 = vmatprep.mubr.f32.mxu1 %v2527_v0  ;;  %v2651_v8 = vpack.c.bf16 %v283_v6, %v279_v5  ;;  %v285_v10 = vld [vmem:[#allocation5 + $0xf0] sm:$0xff]  ;;  %v292_v13 = vld [vmem:[#allocation5 + $0x128] sm:$0xff]  ;;  %v290_v14 = vld [vmem:[#allocation5 + $0x118] sm:$0xff] }
  0x38   :  { %1880 = vmatprep.subr.bf16.mxu1 %v2613_v34  ;;  %v2654_v11 = vpack.c.bf16 %v285_v10, %v281_v9  ;;  %v2659_v15 = vpack.c.bf16 %v292_v13, %v288_v12  ;;  %v294_v16 = vld [vmem:[#allocation5 + $0x138] sm:$0xff]  ;;  %v287_v17 = vld [vmem:[#allocation5 + $0x100] sm:$0xff]  ;;  %v289_v21 = vld [vmem:[#allocation5 + $0x110] sm:$0xff]  ;;  %v74_v13 = vlaneseq }
  0x39   :  { %1858 = vmatpush1.bf16.msra.mxu0 %v2639_v59  ;;  %v291_v18 = vld [vmem:[#allocation5 + $0x120] sm:$0xff]  ;;  %v2661_v19 = vpack.c.bf16 %v294_v16, %v290_v14  ;;  %v293_v22 = vld [vmem:[#allocation5 + $0x130] sm:$0xff]  ;;  %v296_v23 = vld [vmem:[#allocation5 + $0x148] sm:$0xff] }
  0x3a   :  { %1753 = vmatmul.mubr.msk.f32.vlgmr.msra.gmra.mrb[4].mxu1 %vm94_vm0, %v54_v20  ;;  %1860 = vmatprep.subr.bf16.mxu0 %v2647_v3  ;;  %v2663_v20 = vpack.c.bf16 %v291_v18, %v287_v17  ;;  %v2666_v24 = vpack.c.bf16 %v293_v22, %v289_v21  ;;  %v298_v26 = vld [vmem:[#allocation5 + $0x158] sm:$0xff]  ;;  %v295_v31 = vld [vmem:[#allocation5 + $0x140] sm:$0xff]  ;;  %v297_v33 = vld [vmem:[#allocation5 + $0x150] sm:$0xff]  ;;  %v75_v14 = vshrl.u32 %v74_v13, 7 }
  0x3b   :  { %248 = vmatprep.mubr.f32.mxu1 %v2527_v0  ;;  %1882 = vmatpush1.bf16.msra.mxu1 %v2618_v38  ;;  %v302_v27 = vld [vmem:[#allocation5 + $0x178] sm:$0xff]  ;;  %v299_v32 = vld [vmem:[#allocation5 + $0x160] sm:$0xff]  ;;  %v301_v37 = vld [vmem:[#allocation5 + $0x170] sm:$0xff] }
  0x3c   :  { %1884 = vmatprep.subr.bf16.mxu1 %v2625_v46  ;;  %v2672_v29 = vpack.c.bf16 %v302_v27, %v298_v26  ;;  %v2675_v36 = vpack.c.bf16 %v299_v32, %v295_v31  ;;  %v304_v39 = vld [vmem:[#allocation5 + $0x188] sm:$0xff]  ;;  %v2679_v41 = vpack.c.bf16 %v301_v37, %v297_v33  ;;  %v306_v44 = vld [vmem:[#allocation5 + $0x198] sm:$0xff]  ;;  %v303_v48 = vld [vmem:[#allocation5 + $0x180] sm:$0xff]  ;;  %v76_v16 = vsub.s32 0, %v75_v14 }
  0x3d   :  { %1862 = vmatpush1.bf16.msra.mxu0 %v2651_v8  ;;  %v308_v40 = vld [vmem:[#allocation5 + $0x1a8] sm:$0xff]  ;;  %v310_v45 = vld [vmem:[#allocation5 + $0x1b8] sm:$0xff]  ;;  %v307_v51 = vld [vmem:[#allocation5 + $0x1a0] sm:$0xff]  ;;  %v80_v22 = vsub.s32 1, %v75_v14  ;;  %v84_v26 = vsub.s32 2, %v75_v14 }
  0x3e   :  { %1754 = vmatmul.mubr.msk.f32.gmra.mrb[6].mxu1 %vm94_vm0, %v55_v25  ;;  %1864 = vmatprep.subr.bf16.mxu0 %v2659_v15  ;;  %v300_v25 = vld [vmem:[#allocation5 + $0x168] sm:$0xff]  ;;  %v2681_v43 = vpack.c.bf16 %v308_v40, %v304_v39  ;;  %v2683_v49 = vpack.c.bf16 %v310_v45, %v306_v44  ;;  %v305_v52 = vld [vmem:[#allocation5 + $0x190] sm:$0xff]  ;;  %v2686_v55 = vpack.c.bf16 %v307_v51, %v303_v48  ;;  %v314_v60 = vld [vmem:[#allocation5 + $0x1d8] sm:$0xff]  ;;  %v88_v40 = vsub.s32 3, %v75_v14 }
  0x3f   :  { %470 = vmatprep.mubr.f32.mxu1 %v2527_v0  ;;  %1886 = vmatpush1.bf16.msra.mxu1 %v2630_v50  ;;  %v2670_v28 = vpack.c.bf16 %v300_v25, %v296_v23  ;;  %v309_v53 = vld [vmem:[#allocation5 + $0x1b0] sm:$0xff]  ;;  %v312_v56 = vld [vmem:[#allocation5 + $0x1c8] sm:$0xff]  ;;  %v318_v1 = vld [vmem:[#allocation5 + $0x1f8] sm:$0xff] }
  0x40   :  { %1888 = vmatprep.subr.bf16.mxu1 %v2637_v58  ;;  %v316_v57 = vld [vmem:[#allocation5 + $0x1e8] sm:$0xff]  ;;  %v2690_v61 = vpack.c.bf16 %v309_v53, %v305_v52  ;;  %v311_v2 = vld [vmem:[#allocation5 + $0x1c0] sm:$0xff]  ;;  %v2695_v5 = vpack.c.bf16 %v318_v1, %v314_v60  ;;  %v313_v6 = vld [vmem:[#allocation5 + $0x1d0] sm:$0xff] }
  0x41   :  { %1866 = vmatpush1.bf16.msra.mxu0 %v2663_v20  ;;  %v2692_v63 = vpack.c.bf16 %v316_v57, %v312_v56  ;;  %v315_v4 = vld [vmem:[#allocation5 + $0x1e0] sm:$0xff]  ;;  %v317_v9 = vld [vmem:[#allocation5 + $0x1f0] sm:$0xff] }
  0x42   :  { %1868 = vmatprep.subr.bf16.mxu0 %v2670_v28  ;;  %v2698_v10 = vpack.c.bf16 %v315_v4, %v311_v2  ;;  %v2702_v12 = vpack.c.bf16 %v317_v9, %v313_v6  ;;  %v72_v17 = vld [vmem:[%s3066_s3] sm:$0xf] }
  0x43   :  { %1890 = vmatpush1.bf16.msra.mxu1 %v2642_v62  ;;  %v77_v18 = vrot.slane %v72_v17, %v76_v16  ;;  %v2717_v31 = vrot.slane %v72_v17, %v80_v22  ;;  %v85_v39 = vrot.slane %v72_v17, %v84_v26  ;;  %v89_v51 = vrot.slane %v72_v17, %v88_v40 }
  0x44   :  { %1892 = vmatprep.subr.bf16.mxu1 %v2649_v7 }
  0x45   :  { %1870 = vmatpush1.bf16.msra.mxu0 %v2675_v36 }
  0x46   :  { %1872 = vmatprep.subr.bf16.mxu0 %v2681_v43 }
  0x47   :  { %1894 = vmatpush1.bf16.msra.mxu1 %v2654_v11 }
  0x48   :  { %1896 = vmatprep.subr.bf16.mxu1 %v2661_v19 }
  0x49   :  { %1874 = vmatpush1.bf16.msra.mxu0 %v2686_v55 }
  0x4a   :  { %1876 = vmatprep.subr.bf16.mxu0 %v2692_v63 }
  0x4b   :  { %1898 = vmatpush1.bf16.msra.mxu1 %v2666_v24 }
  0x4c   :  { %1900 = vmatprep.subr.bf16.mxu1 %v2672_v29 }
  0x4d   :  { %1878 = vmatpush1.bf16.msra.mxu0 %v2698_v10 }
  0x4e   :  { %1912 = vmatprep.subr.bf16.mxu0 %v2611_v30 }
  0x4f   :  { %1902 = vmatpush1.bf16.msra.mxu1 %v2679_v41 }
  0x50   :  { %1904 = vmatprep.subr.bf16.mxu1 %v2683_v49 }
  0x53   :  { %1906 = vmatpush1.bf16.msra.mxu1 %v2690_v61 }
  0x54   :  { %1908 = vmatprep.subr.bf16.mxu1 %v2695_v5 }
  0x57   :  { %1910 = vmatpush1.bf16.msra.mxu1 %v2702_v12 }
  0x58   :  { %1944 = vmatprep.subr.bf16.mxu1 %v2613_v34 }
 0x105   :  { %v167_v21 = vpop.f32.mrb[0].mxu1 }
 0x106   :  { %v2712_v23 = vadd.f32 %v167_v21, %v77_v18  ;;  %v2714_v25 = vpop.f32.mrb[1].mxu1 }
 0x107   :  { %v2773_v40 = vadd.f32 %v2714_v25, %v2717_v31 }
 0x108   :  { %v1755_v27 = vmul.f32 -1.442695, %v2712_v23 }
 0x109   :  { %v173_v32 = vpop.f32.mrb[2].mxu1 }
 0x10a   :  { %2327 = vpow2.f32 %v1755_v27  ;;  %v2719_v33 = vadd.f32 %v173_v32, %v77_v18  ;;  %v175_v37 = vpop.f32.mrb[3].mxu1 }
 0x10b   :  { %v2722_v44 = vadd.f32 %v175_v37, %v2717_v31 }
 0x10d   :  { %v244_v45 = vpop.f32.mrb[4].mxu1 }
 0x10e   :  { %v2724_v48 = vadd.f32 %v244_v45, %v85_v39  ;;  %v246_v52 = vpop.f32.mrb[5].mxu1 }
 0x10f   :  { %v2727_v57 = vadd.f32 %v246_v52, %v89_v51 }
 0x110   :  { %v1756_v53 = vmul.f32 -1.442695, %v2724_v48 }
 0x111   :  { %v250_v56 = vpop.f32.mrb[6].mxu1 }
 0x112   :  { %2329 = vpow2.f32 %v1756_v53  ;;  %v2729_v60 = vadd.f32 %v250_v56, %v85_v39  ;;  %v252_v1 = vpop.f32.mrb[7].mxu1 }
 0x113   :  { %v2731_v2 = vadd.f32 %v252_v1, %v89_v51  ;;  %2331 = vtanh.f32 %v2727_v57 }
 0x114   :  { %v2328_v4 = vpop.eup %2327 }
 0x115   :  { %v325_v6 = vadd.f32 1.0, %v2328_v4 }
 0x117   :  { %2333 = vrcp.f32 %v325_v6 }
 0x11c   :  { %v2330_v9 = vpop.eup %2329 }
 0x11d   :  { %v326_v13 = vadd.f32 1.0, %v2330_v9  ;;  %v2332_v14 = vpop.eup %2331 }
 0x11f   :  { %2335 = vrcp.f32 %v326_v13 }
 0x121   :  { %v2334_v16 = vpop.eup %2333 }
 0x122   :  { %v2734_v17 = vmul.f32 %v2334_v16, %v2332_v14 }
 0x124   :  { %2337 = vtanh.f32 %v2734_v17 }
 0x129   :  { %v2336_v18 = vpop.eup %2335 }
 0x12e   :  { %v2338_v21 = vpop.eup %2337 }
 0x12f   :  { %v334_v22 = vmul.f32 %v2338_v21, %v2336_v18 }
 0x131   :  { %400 = vmatmul.mubr.f32.vlgmr.msra.gmra.mrb[0].mxu0 %v334_v22  ;;  %471 = vmatmul.mubr.f32.vlgmr.msra.gmra.mrb[8].mxu1 %v334_v22 }
 0x132   :  { %1914 = vmatpush1.bf16.msra.mxu0 %v2615_v35  ;;  %1946 = vmatpush1.bf16.msra.mxu1 %v2618_v38 }
 0x133   :  { %1916 = vmatprep.subr.bf16.mxu0 %v2623_v42  ;;  %1948 = vmatprep.subr.bf16.mxu1 %v2625_v46 }
 0x134   :  { %587 = vmatprep.mubr.f32.mxu0 %v2527_v0  ;;  %658 = vmatprep.mubr.f32.mxu1 %v2527_v0 }
 0x136   :  { %1918 = vmatpush1.bf16.msra.mxu0 %v2627_v47  ;;  %1950 = vmatpush1.bf16.msra.mxu1 %v2630_v50 }
 0x137   :  { %1920 = vmatprep.subr.bf16.mxu0 %v2635_v54  ;;  %1952 = vmatprep.subr.bf16.mxu1 %v2637_v58 }
 0x13a   :  { %1922 = vmatpush1.bf16.msra.mxu0 %v2639_v59  ;;  %1954 = vmatpush1.bf16.msra.mxu1 %v2642_v62 }
 0x13b   :  { %1924 = vmatprep.subr.bf16.mxu0 %v2647_v3  ;;  %1956 = vmatprep.subr.bf16.mxu1 %v2649_v7 }
 0x13e   :  { %1926 = vmatpush1.bf16.msra.mxu0 %v2651_v8  ;;  %1958 = vmatpush1.bf16.msra.mxu1 %v2654_v11 }
 0x13f   :  { %1928 = vmatprep.subr.bf16.mxu0 %v2659_v15  ;;  %1960 = vmatprep.subr.bf16.mxu1 %v2661_v19 }
 0x142   :  { %1930 = vmatpush1.bf16.msra.mxu0 %v2663_v20  ;;  %1962 = vmatpush1.bf16.msra.mxu1 %v2666_v24 }
 0x143   :  { %1932 = vmatprep.subr.bf16.mxu0 %v2670_v28  ;;  %1964 = vmatprep.subr.bf16.mxu1 %v2672_v29 }
 0x146   :  { %1934 = vmatpush1.bf16.msra.mxu0 %v2675_v36  ;;  %1966 = vmatpush1.bf16.msra.mxu1 %v2679_v41 }
 0x147   :  { %1936 = vmatprep.subr.bf16.mxu0 %v2681_v43  ;;  %1968 = vmatprep.subr.bf16.mxu1 %v2683_v49 }
 0x14a   :  { %1938 = vmatpush1.bf16.msra.mxu0 %v2686_v55  ;;  %1970 = vmatpush1.bf16.msra.mxu1 %v2690_v61 }
 0x14b   :  { %1940 = vmatprep.subr.bf16.mxu0 %v2692_v63  ;;  %1972 = vmatprep.subr.bf16.mxu1 %v2695_v5 }
 0x14e   :  { %1942 = vmatpush1.bf16.msra.mxu0 %v2698_v10  ;;  %1974 = vmatpush1.bf16.msra.mxu1 %v2702_v12 }
 0x14f   :  { %1976 = vmatprep.subr.bf16.mxu0 %v2611_v30  ;;  %2008 = vmatprep.subr.bf16.mxu1 %v2613_v34 }
 0x204   :  { %v401_v26 = vpop.f32.mrb[0].mxu0  ;;  %v472_v27 = vpop.f32.mrb[8].mxu1 }
 0x205   :  { %v481_v32 = vrot.slane %v401_v26, 6  ;;  %v403_v37 = vpop.f32.mrb[1].mxu0  ;;  %v474_v39 = vpop.f32.mrb[9].mxu1  ;;  %v483_v1 = vrot.slane %v472_v27, 6  ;;  %v513_v26 = vrot.slane %v2734_v17, 6 }
 0x206   :  { %v482_v45 = vrot.slane %v403_v37, 6  ;;  %v484_v4 = vrot.slane %v474_v39, 6 }
 0x207   :  { %v489_v51 = vadd.f32 %v481_v32, %v2712_v23  ;;  %v491_v6 = vadd.f32 %v483_v1, %v2724_v48 }
 0x208   :  { %v490_v52 = vadd.f32 %v482_v45, %v2773_v40  ;;  %v492_v9 = vadd.f32 %v484_v4, %v2727_v57 }
 0x209   :  { %v1757_v53 = vmul.f32 -1.442695, %v489_v51  ;;  %v1759_v13 = vmul.f32 -1.442695, %v491_v6 }
 0x20a   :  { %v1758_v56 = vmul.f32 -1.442695, %v490_v52 }
 0x20b   :  { %2339 = vpow2.f32 %v1757_v53 }
 0x20c   :  { %2341 = vpow2.f32 %v1758_v56 }
 0x20d   :  { %2343 = vtanh.f32 %v492_v9 }
 0x20e   :  { %2345 = vpow2.f32 %v1759_v13 }
 0x215   :  { %v2340_v14 = vpop.eup %2339 }
 0x216   :  { %v502_v16 = vadd.f32 1.0, %v2340_v14  ;;  %v2342_v25 = vpop.eup %2341 }
 0x217   :  { %v503_v31 = vadd.f32 1.0, %v2342_v25  ;;  %v2344_v18 = vpop.eup %2343 }
 0x218   :  { %2347 = vrcp.f32 %v502_v16  ;;  %v2346_v21 = vpop.eup %2345 }
 0x219   :  { %2349 = vrcp.f32 %v503_v31  ;;  %v504_v37 = vadd.f32 1.0, %v2346_v21 }
 0x21b   :  { %2351 = vrcp.f32 %v504_v37 }
 0x222   :  { %v2348_v22 = vpop.eup %2347 }
 0x223   :  { %v516_v27 = vmul.f32 %v2348_v22, %v2344_v18  ;;  %v2350_v32 = vpop.eup %2349 }
 0x224   :  { %v515_v39 = vmul.f32 %v2350_v32, %v513_v26 }
 0x225   :  { %v2352_v51 = vpop.eup %2351 }
 0x226   :  { %v2780_v45 = vadd.f32 %v516_v27, %v515_v39 }
 0x228   :  { %2353 = vtanh.f32 %v2780_v45 }
 0x232   :  { %v2354_v52 = vpop.eup %2353 }
 0x233   :  { %v519_v53 = vmul.f32 %v2354_v52, %v2352_v51 }
 0x235   :  { %v521_v56 = vrot.slane %v519_v53, 2 }
 0x237   :  { %588 = vmatmul.mubr.f32.vlgmr.msra.gmra.mrb[2].mxu0 %v521_v56  ;;  %659 = vmatmul.mubr.f32.vlgmr.msra.gmra.mrb[10].mxu1 %v521_v56 }
 0x238   :  { %1978 = vmatpush1.bf16.msra.mxu0 %v2615_v35  ;;  %2010 = vmatpush1.bf16.msra.mxu1 %v2618_v38 }
 0x239   :  { %1980 = vmatprep.subr.bf16.mxu0 %v2623_v42  ;;  %2012 = vmatprep.subr.bf16.mxu1 %v2625_v46 }
 0x23a   :  { %775 = vmatprep.mubr.f32.mxu0 %v2527_v0  ;;  %846 = vmatprep.mubr.f32.mxu1 %v2527_v0 }
 0x23c   :  { %1982 = vmatpush1.bf16.msra.mxu0 %v2627_v47  ;;  %2014 = vmatpush1.bf16.msra.mxu1 %v2630_v50 }
 0x23d   :  { %1984 = vmatprep.subr.bf16.mxu0 %v2635_v54  ;;  %2016 = vmatprep.subr.bf16.mxu1 %v2637_v58 }
 0x240   :  { %1986 = vmatpush1.bf16.msra.mxu0 %v2639_v59  ;;  %2018 = vmatpush1.bf16.msra.mxu1 %v2642_v62 }
 0x241   :  { %1988 = vmatprep.subr.bf16.mxu0 %v2647_v3  ;;  %2020 = vmatprep.subr.bf16.mxu1 %v2649_v7 }
 0x244   :  { %1990 = vmatpush1.bf16.msra.mxu0 %v2651_v8  ;;  %2022 = vmatpush1.bf16.msra.mxu1 %v2654_v11 }
 0x245   :  { %1992 = vmatprep.subr.bf16.mxu0 %v2659_v15  ;;  %2024 = vmatprep.subr.bf16.mxu1 %v2661_v19 }
 0x248   :  { %1994 = vmatpush1.bf16.msra.mxu0 %v2663_v20  ;;  %2026 = vmatpush1.bf16.msra.mxu1 %v2666_v24 }
 0x249   :  { %1996 = vmatprep.subr.bf16.mxu0 %v2670_v28  ;;  %2028 = vmatprep.subr.bf16.mxu1 %v2672_v29 }
 0x24c   :  { %1998 = vmatpush1.bf16.msra.mxu0 %v2675_v36  ;;  %2030 = vmatpush1.bf16.msra.mxu1 %v2679_v41 }
 0x24d   :  { %2000 = vmatprep.subr.bf16.mxu0 %v2681_v43  ;;  %2032 = vmatprep.subr.bf16.mxu1 %v2683_v49 }
 0x250   :  { %2002 = vmatpush1.bf16.msra.mxu0 %v2686_v55  ;;  %2034 = vmatpush1.bf16.msra.mxu1 %v2690_v61 }
 0x251   :  { %2004 = vmatprep.subr.bf16.mxu0 %v2692_v63  ;;  %2036 = vmatprep.subr.bf16.mxu1 %v2695_v5 }
 0x254   :  { %2006 = vmatpush1.bf16.msra.mxu0 %v2698_v10  ;;  %2038 = vmatpush1.bf16.msra.mxu1 %v2702_v12 }
 0x255   :  { %2040 = vmatprep.subr.bf16.mxu0 %v2611_v30  ;;  %2072 = vmatprep.subr.bf16.mxu1 %v2613_v34 }
 0x30a   :  { %v589_v17 = vpop.f32.mrb[2].mxu0  ;;  %v660_v1 = vpop.f32.mrb[10].mxu1 }
 0x30b   :  { %v669_v4 = vrot.slane %v589_v17, 4  ;;  %v591_v6 = vpop.f32.mrb[3].mxu0  ;;  %v662_v9 = vpop.f32.mrb[11].mxu1  ;;  %v671_v18 = vrot.slane %v660_v1, 4  ;;  %v701_v17 = vrot.slane %v2780_v45, 6 }
 0x30c   :  { %v670_v13 = vrot.slane %v591_v6, 4  ;;  %v672_v21 = vrot.slane %v662_v9, 4 }
 0x30d   :  { %v677_v14 = vadd.f32 %v669_v4, %v2712_v23  ;;  %v679_v22 = vadd.f32 %v671_v18, %v2724_v48 }
 0x30e   :  { %v678_v16 = vadd.f32 %v670_v13, %v2773_v40  ;;  %v680_v26 = vadd.f32 %v672_v21, %v2727_v57 }
 0x30f   :  { %v1760_v25 = vmul.f32 -1.442695, %v677_v14  ;;  %v1762_v27 = vmul.f32 -1.442695, %v679_v22 }
 0x310   :  { %v1761_v31 = vmul.f32 -1.442695, %v678_v16 }
 0x311   :  { %2355 = vpow2.f32 %v1760_v25 }
 0x312   :  { %2357 = vpow2.f32 %v1761_v31 }
 0x313   :  { %2359 = vtanh.f32 %v680_v26 }
 0x314   :  { %2361 = vpow2.f32 %v1762_v27 }
 0x31b   :  { %v2356_v32 = vpop.eup %2355 }
 0x31c   :  { %v690_v37 = vadd.f32 1.0, %v2356_v32  ;;  %v2358_v39 = vpop.eup %2357 }
 0x31d   :  { %v691_v51 = vadd.f32 1.0, %v2358_v39  ;;  %v2360_v52 = vpop.eup %2359 }
 0x31e   :  { %2363 = vrcp.f32 %v690_v37  ;;  %v2362_v53 = vpop.eup %2361 }
 0x31f   :  { %2365 = vrcp.f32 %v691_v51  ;;  %v692_v6 = vadd.f32 1.0, %v2362_v53 }
 0x321   :  { %2367 = vrcp.f32 %v692_v6 }
 0x328   :  { %v2364_v56 = vpop.eup %2363 }
 0x329   :  { %v704_v1 = vmul.f32 %v2364_v56, %v2360_v52  ;;  %v2366_v4 = vpop.eup %2365 }
 0x32a   :  { %v703_v9 = vmul.f32 %v2366_v4, %v701_v17 }
 0x32b   :  { %v2368_v14 = vpop.eup %2367 }
 0x32c   :  { %v2822_v13 = vadd.f32 %v704_v1, %v703_v9 }
 0x32e   :  { %2369 = vtanh.f32 %v2822_v13 }
 0x338   :  { %v2370_v16 = vpop.eup %2369 }
 0x339   :  { %v707_v25 = vmul.f32 %v2370_v16, %v2368_v14 }
 0x33b   :  { %v709_v31 = vrot.slane %v707_v25, 4  ;;  %v889_v25 = vrot.slane %v2822_v13, 6 }
 0x33d   :  { %776 = vmatmul.mubr.f32.vlgmr.msra.gmra.mrb[4].mxu0 %v709_v31  ;;  %847 = vmatmul.mubr.f32.vlgmr.msra.gmra.mrb[12].mxu1 %v709_v31 }
 0x33e   :  { %2042 = vmatpush1.bf16.msra.mxu0 %v2615_v35  ;;  %2074 = vmatpush1.bf16.msra.mxu1 %v2618_v38 }
 0x33f   :  { %2044 = vmatprep.subr.bf16.mxu0 %v2623_v42  ;;  %2076 = vmatprep.subr.bf16.mxu1 %v2625_v46 }
 0x340   :  { %963 = vmatprep.mubr.f32.mxu0 %v2527_v0  ;;  %1034 = vmatprep.mubr.f32.mxu1 %v2527_v0 }
 0x342   :  { %2046 = vmatpush1.bf16.msra.mxu0 %v2627_v47  ;;  %2078 = vmatpush1.bf16.msra.mxu1 %v2630_v50 }
 0x343   :  { %2048 = vmatprep.subr.bf16.mxu0 %v2635_v54  ;;  %2080 = vmatprep.subr.bf16.mxu1 %v2637_v58 }
 0x346   :  { %2050 = vmatpush1.bf16.msra.mxu0 %v2639_v59  ;;  %2082 = vmatpush1.bf16.msra.mxu1 %v2642_v62 }
 0x347   :  { %2052 = vmatprep.subr.bf16.mxu0 %v2647_v3  ;;  %2084 = vmatprep.subr.bf16.mxu1 %v2649_v7 }
 0x34a   :  { %2054 = vmatpush1.bf16.msra.mxu0 %v2651_v8  ;;  %2086 = vmatpush1.bf16.msra.mxu1 %v2654_v11 }
 0x34b   :  { %2056 = vmatprep.subr.bf16.mxu0 %v2659_v15  ;;  %2088 = vmatprep.subr.bf16.mxu1 %v2661_v19 }
 0x34e   :  { %2058 = vmatpush1.bf16.msra.mxu0 %v2663_v20  ;;  %2090 = vmatpush1.bf16.msra.mxu1 %v2666_v24 }
 0x34f   :  { %2060 = vmatprep.subr.bf16.mxu0 %v2670_v28  ;;  %2092 = vmatprep.subr.bf16.mxu1 %v2672_v29 }
 0x352   :  { %2062 = vmatpush1.bf16.msra.mxu0 %v2675_v36  ;;  %2094 = vmatpush1.bf16.msra.mxu1 %v2679_v41 }
 0x353   :  { %2064 = vmatprep.subr.bf16.mxu0 %v2681_v43  ;;  %2096 = vmatprep.subr.bf16.mxu1 %v2683_v49 }
 0x356   :  { %2066 = vmatpush1.bf16.msra.mxu0 %v2686_v55  ;;  %2098 = vmatpush1.bf16.msra.mxu1 %v2690_v61 }
 0x357   :  { %2068 = vmatprep.subr.bf16.mxu0 %v2692_v63  ;;  %2100 = vmatprep.subr.bf16.mxu1 %v2695_v5 }
 0x35a   :  { %2070 = vmatpush1.bf16.msra.mxu0 %v2698_v10  ;;  %2102 = vmatpush1.bf16.msra.mxu1 %v2702_v12 }
 0x35b   :  { %2104 = vmatprep.subr.bf16.mxu0 %v2611_v30  ;;  %2136 = vmatprep.subr.bf16.mxu1 %v2613_v34 }
 0x410   :  { %v777_v45 = vpop.f32.mrb[4].mxu0  ;;  %v848_v18 = vpop.f32.mrb[12].mxu1 }
 0x411   :  { %v857_v21 = vrot.slane %v777_v45, 2  ;;  %v779_v22 = vpop.f32.mrb[5].mxu0  ;;  %v850_v26 = vpop.f32.mrb[13].mxu1  ;;  %v859_v52 = vrot.slane %v848_v18, 2 }
 0x412   :  { %v858_v27 = vrot.slane %v779_v22, 2  ;;  %v860_v53 = vrot.slane %v850_v26, 2 }
 0x413   :  { %v865_v32 = vadd.f32 %v857_v21, %v2712_v23  ;;  %v867_v56 = vadd.f32 %v859_v52, %v2724_v48 }
 0x414   :  { %v866_v37 = vadd.f32 %v858_v27, %v2773_v40  ;;  %v868_v17 = vadd.f32 %v860_v53, %v2727_v57 }
 0x415   :  { %v1763_v39 = vmul.f32 -1.442695, %v865_v32  ;;  %v1765_v1 = vmul.f32 -1.442695, %v867_v56 }
 0x416   :  { %v1764_v51 = vmul.f32 -1.442695, %v866_v37 }
 0x417   :  { %2371 = vpow2.f32 %v1763_v39 }
 0x418   :  { %2373 = vpow2.f32 %v1764_v51 }
 0x419   :  { %2375 = vtanh.f32 %v868_v17 }
 0x41a   :  { %2377 = vpow2.f32 %v1765_v1 }
 0x421   :  { %v2372_v4 = vpop.eup %2371 }
 0x422   :  { %v878_v6 = vadd.f32 1.0, %v2372_v4  ;;  %v2374_v9 = vpop.eup %2373 }
 0x423   :  { %v879_v23 = vadd.f32 1.0, %v2374_v9  ;;  %v2376_v40 = vpop.eup %2375 }
 0x424   :  { %2379 = vrcp.f32 %v878_v6  ;;  %v2378_v14 = vpop.eup %2377 }
 0x425   :  { %2381 = vrcp.f32 %v879_v23  ;;  %v880_v18 = vadd.f32 1.0, %v2378_v14 }
 0x427   :  { %2383 = vrcp.f32 %v880_v18 }
 0x42e   :  { %v2380_v16 = vpop.eup %2379 }
 0x42f   :  { %v892_v31 = vmul.f32 %v2380_v16, %v2376_v40  ;;  %v2382_v45 = vpop.eup %2381 }
 0x430   :  { %v891_v48 = vmul.f32 %v2382_v45, %v889_v25 }
 0x431   :  { %v2384_v57 = vpop.eup %2383 }
 0x432   :  { %v2864_v21 = vadd.f32 %v892_v31, %v891_v48 }
 0x434   :  { %2385 = vtanh.f32 %v2864_v21  ;;  %v1065_v31 = vrot.slane %v2864_v21, 6 }
 0x43e   :  { %v2386_v22 = vpop.eup %2385 }
 0x43f   :  { %v895_v26 = vmul.f32 %v2386_v22, %v2384_v57 }
 0x441   :  { %v897_v27 = vrot.slane %v895_v26, 6 }
 0x443   :  { %964 = vmatmul.mubr.f32.vlgmr.msra.gmra.mrb[6].mxu0 %v897_v27  ;;  %1035 = vmatmul.mubr.f32.vlgmr.msra.gmra.mrb[14].mxu1 %v897_v27 }
 0x444   :  { %2106 = vmatpush1.bf16.msra.mxu0 %v2615_v35  ;;  %2138 = vmatpush1.bf16.msra.mxu1 %v2618_v38 }
 0x445   :  { %2108 = vmatprep.subr.bf16.mxu0 %v2623_v42  ;;  %2140 = vmatprep.subr.bf16.mxu1 %v2625_v46 }
 0x446   :  { %1136 = vmatprep.mubr.f32.mxu0 %v2527_v0  ;;  %1207 = vmatprep.mubr.f32.mxu1 %v2527_v0 }
 0x448   :  { %2110 = vmatpush1.bf16.msra.mxu0 %v2627_v47  ;;  %2142 = vmatpush1.bf16.msra.mxu1 %v2630_v50 }
 0x449   :  { %2112 = vmatprep.subr.bf16.mxu0 %v2635_v54  ;;  %2144 = vmatprep.subr.bf16.mxu1 %v2637_v58 }
 0x44c   :  { %2114 = vmatpush1.bf16.msra.mxu0 %v2639_v59  ;;  %2146 = vmatpush1.bf16.msra.mxu1 %v2642_v62 }
 0x44d   :  { %2116 = vmatprep.subr.bf16.mxu0 %v2647_v3  ;;  %2148 = vmatprep.subr.bf16.mxu1 %v2649_v7 }
 0x450   :  { %2118 = vmatpush1.bf16.msra.mxu0 %v2651_v8  ;;  %2150 = vmatpush1.bf16.msra.mxu1 %v2654_v11 }
 0x451   :  { %2120 = vmatprep.subr.bf16.mxu0 %v2659_v15  ;;  %2152 = vmatprep.subr.bf16.mxu1 %v2661_v19 }
 0x454   :  { %2122 = vmatpush1.bf16.msra.mxu0 %v2663_v20  ;;  %2154 = vmatpush1.bf16.msra.mxu1 %v2666_v24 }
 0x455   :  { %2124 = vmatprep.subr.bf16.mxu0 %v2670_v28  ;;  %2156 = vmatprep.subr.bf16.mxu1 %v2672_v29 }
 0x458   :  { %2126 = vmatpush1.bf16.msra.mxu0 %v2675_v36  ;;  %2158 = vmatpush1.bf16.msra.mxu1 %v2679_v41 }
 0x459   :  { %2128 = vmatprep.subr.bf16.mxu0 %v2681_v43  ;;  %2160 = vmatprep.subr.bf16.mxu1 %v2683_v49 }
 0x45c   :  { %2130 = vmatpush1.bf16.msra.mxu0 %v2686_v55  ;;  %2162 = vmatpush1.bf16.msra.mxu1 %v2690_v61 }
 0x45d   :  { %2132 = vmatprep.subr.bf16.mxu0 %v2692_v63  ;;  %2164 = vmatprep.subr.bf16.mxu1 %v2695_v5 }
 0x460   :  { %2134 = vmatpush1.bf16.msra.mxu0 %v2698_v10  ;;  %2166 = vmatpush1.bf16.msra.mxu1 %v2702_v12 }
 0x461   :  { %2168 = vmatprep.subr.bf16.mxu0 %v2611_v30  ;;  %2200 = vmatprep.subr.bf16.mxu1 %v2613_v34 }
 0x516   :  { %v965_v13 = vpop.f32.mrb[6].mxu0  ;;  %v1036_v32 = vpop.f32.mrb[14].mxu1 }
 0x517   :  { %v1041_v37 = vadd.f32 %v965_v13, %v2719_v33  ;;  %v967_v39 = vpop.f32.mrb[7].mxu0  ;;  %v1038_v51 = vpop.f32.mrb[15].mxu1  ;;  %v1043_v17 = vadd.f32 %v1036_v32, %v2729_v60 }
 0x518   :  { %v1042_v52 = vadd.f32 %v967_v39, %v2722_v44  ;;  %v1044_v1 = vadd.f32 %v1038_v51, %v2731_v2 }
 0x519   :  { %v1766_v53 = vmul.f32 -1.442695, %v1041_v37  ;;  %v1768_v4 = vmul.f32 -1.442695, %v1043_v17 }
 0x51a   :  { %v1767_v56 = vmul.f32 -1.442695, %v1042_v52 }
 0x51b   :  { %2387 = vpow2.f32 %v1766_v53 }
 0x51c   :  { %2389 = vpow2.f32 %v1767_v56 }
 0x51d   :  { %2391 = vtanh.f32 %v1044_v1 }
 0x51e   :  { %2393 = vpow2.f32 %v1768_v4 }
 0x525   :  { %v2388_v6 = vpop.eup %2387 }
 0x526   :  { %v1054_v9 = vadd.f32 1.0, %v2388_v6  ;;  %v2390_v23 = vpop.eup %2389 }
 0x527   :  { %v1055_v40 = vadd.f32 1.0, %v2390_v23  ;;  %v2392_v14 = vpop.eup %2391 }
 0x528   :  { %2395 = vrcp.f32 %v1054_v9  ;;  %v2394_v16 = vpop.eup %2393 }
 0x529   :  { %2397 = vrcp.f32 %v1055_v40  ;;  %v1056_v48 = vadd.f32 1.0, %v2394_v16 }
 0x52b   :  { %2399 = vrcp.f32 %v1056_v48 }
 0x532   :  { %v2396_v25 = vpop.eup %2395 }
 0x533   :  { %v1068_v45 = vmul.f32 %v2396_v25, %v2392_v14  ;;  %v2398_v18 = vpop.eup %2397 }
 0x534   :  { %v1067_v57 = vmul.f32 %v2398_v18, %v1065_v31 }
 0x535   :  { %v2400_v26 = vpop.eup %2399 }
 0x536   :  { %v2906_v22 = vadd.f32 %v1068_v45, %v1067_v57 }
 0x538   :  { %2401 = vtanh.f32 %v2906_v22  ;;  %v1250_v18 = vrot.slane %v2906_v22, 6 }
 0x542   :  { %v2402_v27 = vpop.eup %2401 }
 0x543   :  { %v1071_v13 = vmul.f32 %v2402_v27, %v2400_v26 }
 0x545   :  { %1137 = vmatmul.mubr.f32.vlgmr.msra.gmra.mrb[8].mxu0 %v1071_v13  ;;  %1208 = vmatmul.mubr.f32.vlgmr.msra.gmra.mrb[16].mxu1 %v1071_v13 }
 0x546   :  { %2170 = vmatpush1.bf16.msra.mxu0 %v2615_v35  ;;  %2202 = vmatpush1.bf16.msra.mxu1 %v2618_v38 }
 0x547   :  { %2172 = vmatprep.subr.bf16.mxu0 %v2623_v42  ;;  %2204 = vmatprep.subr.bf16.mxu1 %v2625_v46 }
 0x548   :  { %1324 = vmatprep.mubr.f32.mxu0 %v2527_v0  ;;  %1395 = vmatprep.mubr.f32.mxu1 %v2527_v0 }
 0x54a   :  { %2174 = vmatpush1.bf16.msra.mxu0 %v2627_v47  ;;  %2206 = vmatpush1.bf16.msra.mxu1 %v2630_v50 }
 0x54b   :  { %2176 = vmatprep.subr.bf16.mxu0 %v2635_v54  ;;  %2208 = vmatprep.subr.bf16.mxu1 %v2637_v58 }
 0x54e   :  { %2178 = vmatpush1.bf16.msra.mxu0 %v2639_v59  ;;  %2210 = vmatpush1.bf16.msra.mxu1 %v2642_v62 }
 0x54f   :  { %2180 = vmatprep.subr.bf16.mxu0 %v2647_v3  ;;  %2212 = vmatprep.subr.bf16.mxu1 %v2649_v7 }
 0x552   :  { %2182 = vmatpush1.bf16.msra.mxu0 %v2651_v8  ;;  %2214 = vmatpush1.bf16.msra.mxu1 %v2654_v11 }
 0x553   :  { %2184 = vmatprep.subr.bf16.mxu0 %v2659_v15  ;;  %2216 = vmatprep.subr.bf16.mxu1 %v2661_v19 }
 0x556   :  { %2186 = vmatpush1.bf16.msra.mxu0 %v2663_v20  ;;  %2218 = vmatpush1.bf16.msra.mxu1 %v2666_v24 }
 0x557   :  { %2188 = vmatprep.subr.bf16.mxu0 %v2670_v28  ;;  %2220 = vmatprep.subr.bf16.mxu1 %v2672_v29 }
 0x55a   :  { %2190 = vmatpush1.bf16.msra.mxu0 %v2675_v36  ;;  %2222 = vmatpush1.bf16.msra.mxu1 %v2679_v41 }
 0x55b   :  { %2192 = vmatprep.subr.bf16.mxu0 %v2681_v43  ;;  %2224 = vmatprep.subr.bf16.mxu1 %v2683_v49 }
 0x55e   :  { %2194 = vmatpush1.bf16.msra.mxu0 %v2686_v55  ;;  %2226 = vmatpush1.bf16.msra.mxu1 %v2690_v61 }
 0x55f   :  { %2196 = vmatprep.subr.bf16.mxu0 %v2692_v63  ;;  %2228 = vmatprep.subr.bf16.mxu1 %v2695_v5 }
 0x562   :  { %2198 = vmatpush1.bf16.msra.mxu0 %v2698_v10  ;;  %2230 = vmatpush1.bf16.msra.mxu1 %v2702_v12 }
 0x563   :  { %2232 = vmatprep.subr.bf16.mxu0 %v2611_v30  ;;  %2264 = vmatprep.subr.bf16.mxu1 %v2613_v34 }
 0x618   :  { %v1138_v21 = vpop.f32.mrb[8].mxu0  ;;  %v1209_v32 = vpop.f32.mrb[16].mxu1 }
 0x619   :  { %v1218_v37 = vrot.slane %v1138_v21, 6  ;;  %v1140_v39 = vpop.f32.mrb[9].mxu0  ;;  %v1211_v51 = vpop.f32.mrb[17].mxu1  ;;  %v1220_v4 = vrot.slane %v1209_v32, 6 }
 0x61a   :  { %v1219_v52 = vrot.slane %v1140_v39, 6  ;;  %v1221_v6 = vrot.slane %v1211_v51, 6 }
 0x61b   :  { %v1226_v53 = vadd.f32 %v1218_v37, %v2719_v33  ;;  %v1228_v30 = vadd.f32 %v1220_v4, %v2729_v60  ;;  %v1637_v4 = vld [vmem:[%s3067_s4 + $0x18] sm:$0xff] }
 0x61c   :  { %v1227_v56 = vadd.f32 %v1219_v52, %v2722_v44  ;;  %v1229_v34 = vadd.f32 %v1221_v6, %v2731_v2  ;;  %v1634_v52 = vld [vmem:[%s3067_s4] sm:$0xff] }
 0x61d   :  { %v1769_v17 = vmul.f32 -1.442695, %v1226_v53  ;;  %v1771_v9 = vmul.f32 -1.442695, %v1228_v30  ;;  %v1635_v53 = vld [vmem:[%s3067_s4 + $0x8] sm:$0xff]  ;;  %v1638_v30 = vld [vmem:[%s3067_s4 + $0x20] sm:$0xff] }
 0x61e   :  { %v1770_v1 = vmul.f32 -1.442695, %v1227_v56  ;;  %v2296_v56 = vpack.c.bf16 %v1635_v53, %v1634_v52 }
 0x61f   :  { %2403 = vpow2.f32 %v1769_v17  ;;  %v2528_v17 = vmov 0.0|0.0  }
 0x620   :  { %2405 = vpow2.f32 %v1770_v1  ;;  %v1636_v1 = vld [vmem:[%s3067_s4 + $0x10] sm:$0xff] }
 0x621   :  { %2407 = vtanh.f32 %v1229_v34  ;;  %v2299_v6 = vpack.c.bf16 %v1637_v4, %v1636_v1  ;;  %v1639_v34 = vld [vmem:[%s3067_s4 + $0x28] sm:$0xff] }
 0x622   :  { %2409 = vpow2.f32 %v1771_v9  ;;  %v2302_v9 = vpack.c.bf16 %v1639_v34, %v1638_v30 }
 0x629   :  { %v2404_v23 = vpop.eup %2403 }
 0x62a   :  { %v1239_v40 = vadd.f32 1.0, %v2404_v23  ;;  %v2406_v14 = vpop.eup %2405  ;;  %v1640_v23 = vld [vmem:[%s3067_s4 + $0x30] sm:$0xff] }
 0x62b   :  { %v1240_v16 = vadd.f32 1.0, %v2406_v14  ;;  %v2408_v25 = vpop.eup %2407 }
 0x62c   :  { %2411 = vrcp.f32 %v1239_v40  ;;  %v2410_v31 = vpop.eup %2409  ;;  %v1641_v40 = vld [vmem:[%s3067_s4 + $0x38] sm:$0xff] }
 0x62d   :  { %2413 = vrcp.f32 %v1240_v16  ;;  %v1241_v26 = vadd.f32 1.0, %v2410_v31  ;;  %v2305_v14 = vpack.c.bf16 %v1641_v40, %v1640_v23  ;;  %v1642_v16 = vld [vmem:[%s3067_s4 + $0x40] sm:$0xff] }
 0x62f   :  { %2415 = vrcp.f32 %v1241_v26  ;;  %v1647_v26 = vld [vmem:[%s3067_s4 + $0x68] sm:$0xff] }
 0x636   :  { %v2412_v45 = vpop.eup %2411 }
 0x637   :  { %v1253_v48 = vmul.f32 %v2412_v45, %v2408_v25  ;;  %v2414_v57 = vpop.eup %2413  ;;  %v1643_v25 = vld [vmem:[%s3067_s4 + $0x48] sm:$0xff]  ;;  %v1644_v45 = vld [vmem:[%s3067_s4 + $0x50] sm:$0xff] }
 0x638   :  { %v1252_v27 = vmul.f32 %v2414_v57, %v1250_v18  ;;  %v2308_v31 = vpack.c.bf16 %v1643_v25, %v1642_v16  ;;  %v1645_v18 = vld [vmem:[%s3067_s4 + $0x58] sm:$0xff]  ;;  %v1646_v57 = vld [vmem:[%s3067_s4 + $0x60] sm:$0xff] }
 0x639   :  { %v2416_v21 = vpop.eup %2415 }
 0x63a   :  { %v2948_v13 = vadd.f32 %v1253_v48, %v1252_v27  ;;  %v2311_v48 = vpack.c.bf16 %v1645_v18, %v1644_v45  ;;  %v2314_v27 = vpack.c.bf16 %v1647_v26, %v1646_v57 }
 0x63c   :  { %2417 = vtanh.f32 %v2948_v13 }
 0x646   :  { %v2418_v32 = vpop.eup %2417 }
 0x647   :  { %v1256_v37 = vmul.f32 %v2418_v32, %v2416_v21  ;;  %v1649_v21 = vld [vmem:[%s3067_s4 + $0x78] sm:$0xff] }
 0x649   :  { %v1258_v39 = vrot.slane %v1256_v37, 2 }
 0x64b   :  { %1325 = vmatmul.mubr.f32.vlgmr.msra.gmra.mrb[10].mxu0 %v1258_v39  ;;  %1396 = vmatmul.mubr.f32.vlgmr.msra.gmra.mrb[18].mxu1 %v1258_v39 }
 0x64c   :  { %2234 = vmatpush1.bf16.msra.mxu0 %v2615_v35  ;;  %2266 = vmatpush1.bf16.msra.mxu1 %v2618_v38 }
 0x64d   :  { %2236 = vmatprep.subr.bf16.mxu0 %v2623_v42  ;;  %2268 = vmatprep.subr.bf16.mxu1 %v2625_v46 }
 0x64e   :  { %1512 = vmatprep.mubr.f32.mxu0 %v2527_v0  ;;  %1583 = vmatprep.mubr.f32.mxu1 %v2527_v0 }
 0x650   :  { %2238 = vmatpush1.bf16.msra.mxu0 %v2627_v47  ;;  %2270 = vmatpush1.bf16.msra.mxu1 %v2630_v50 }
 0x651   :  { %2240 = vmatprep.subr.bf16.mxu0 %v2635_v54  ;;  %2272 = vmatprep.subr.bf16.mxu1 %v2637_v58 }
 0x654   :  { %2242 = vmatpush1.bf16.msra.mxu0 %v2639_v59  ;;  %2274 = vmatpush1.bf16.msra.mxu1 %v2642_v62 }
 0x655   :  { %2244 = vmatprep.subr.bf16.mxu0 %v2647_v3  ;;  %2276 = vmatprep.subr.bf16.mxu1 %v2649_v7 }
 0x658   :  { %2246 = vmatpush1.bf16.msra.mxu0 %v2651_v8  ;;  %2278 = vmatpush1.bf16.msra.mxu1 %v2654_v11 }
 0x659   :  { %2248 = vmatprep.subr.bf16.mxu0 %v2659_v15  ;;  %2280 = vmatprep.subr.bf16.mxu1 %v2661_v19 }
 0x65c   :  { %2250 = vmatpush1.bf16.msra.mxu0 %v2663_v20  ;;  %2282 = vmatpush1.bf16.msra.mxu1 %v2666_v24 }
 0x65d   :  { %2252 = vmatprep.subr.bf16.mxu0 %v2670_v28  ;;  %2284 = vmatprep.subr.bf16.mxu1 %v2672_v29 }
 0x660   :  { %2254 = vmatpush1.bf16.msra.mxu0 %v2675_v36  ;;  %2286 = vmatpush1.bf16.msra.mxu1 %v2679_v41 }
 0x661   :  { %2256 = vmatprep.subr.bf16.mxu0 %v2681_v43  ;;  %2288 = vmatprep.subr.bf16.mxu1 %v2683_v49  ;;  %v1438_v43 = vrot.slane %v2948_v13, 6  ;;  %v1648_v13 = vld [vmem:[%s3067_s4 + $0x70] sm:$0xff] }
 0x662   :  { %v2317_v32 = vpack.c.bf16 %v1649_v21, %v1648_v13 }
 0x664   :  { %2258 = vmatpush1.bf16.msra.mxu0 %v2686_v55  ;;  %2290 = vmatpush1.bf16.msra.mxu1 %v2690_v61 }
 0x665   :  { %2260 = vmatprep.subr.bf16.mxu0 %v2692_v63  ;;  %2292 = vmatprep.subr.bf16.mxu1 %v2695_v5 }
 0x668   :  { %2262 = vmatpush1.bf16.msra.mxu0 %v2698_v10  ;;  %2294 = vmatpush1.bf16.msra.mxu1 %v2702_v12 }
 0x669   :  { %2295 = vmatprep.subr.bf16.mxu0 %v2528_v17 }
 0x71e   :  { %v1326_v35 = vpop.f32.mrb[10].mxu0  ;;  %v1397_v38 = vpop.f32.mrb[18].mxu1 }
 0x71f   :  { %v1406_v42 = vrot.slane %v1326_v35, 4  ;;  %v1328_v46 = vpop.f32.mrb[11].mxu0  ;;  %v1399_v47 = vpop.f32.mrb[19].mxu1  ;;  %v1408_v3 = vrot.slane %v1397_v38, 4 }
 0x720   :  { %v1407_v50 = vrot.slane %v1328_v46, 4  ;;  %v1409_v7 = vrot.slane %v1399_v47, 4 }
 0x721   :  { %v1414_v54 = vadd.f32 %v1406_v42, %v2719_v33  ;;  %v1416_v8 = vadd.f32 %v1408_v3, %v2729_v60 }
 0x722   :  { %v1415_v58 = vadd.f32 %v1407_v50, %v2722_v44  ;;  %v1417_v11 = vadd.f32 %v1409_v7, %v2731_v2 }
 0x723   :  { %v1772_v59 = vmul.f32 -1.442695, %v1414_v54  ;;  %v1774_v15 = vmul.f32 -1.442695, %v1416_v8 }
 0x724   :  { %v1773_v62 = vmul.f32 -1.442695, %v1415_v58 }
 0x725   :  { %2419 = vpow2.f32 %v1772_v59 }
 0x726   :  { %2421 = vpow2.f32 %v1773_v62 }
 0x727   :  { %2423 = vtanh.f32 %v1417_v11 }
 0x728   :  { %2425 = vpow2.f32 %v1774_v15 }
 0x72f   :  { %v2420_v19 = vpop.eup %2419 }
 0x730   :  { %v1427_v20 = vadd.f32 1.0, %v2420_v19  ;;  %v2422_v24 = vpop.eup %2421 }
 0x731   :  { %v1428_v28 = vadd.f32 1.0, %v2422_v24  ;;  %v2424_v29 = vpop.eup %2423 }
 0x732   :  { %2427 = vrcp.f32 %v1427_v20  ;;  %v2426_v36 = vpop.eup %2425 }
 0x733   :  { %2429 = vrcp.f32 %v1428_v28  ;;  %v1429_v61 = vadd.f32 1.0, %v2426_v36 }
 0x735   :  { %2431 = vrcp.f32 %v1429_v61  ;;  %v1778_v61 = vld [vmem:[%s3068_s5] ss:$0 sm:$0xff] }
 0x73c   :  { %v2428_v41 = vpop.eup %2427 }
 0x73d   :  { %v1441_v49 = vmul.f32 %v2428_v41, %v2424_v29  ;;  %v2430_v55 = vpop.eup %2429 }
 0x73e   :  { %v1440_v63 = vmul.f32 %v2430_v55, %v1438_v43 }
 0x73f   :  { %v2432_v10 = vpop.eup %2431 }
 0x740   :  { %v2988_v5 = vadd.f32 %v1441_v49, %v1440_v63 }
 0x742   :  { %2433 = vtanh.f32 %v2988_v5  ;;  %v1626_v24 = vrot.slane %v2988_v5, 6 }
 0x74c   :  { %v2434_v12 = vpop.eup %2433 }
 0x74d   :  { %v1444_v22 = vmul.f32 %v2434_v12, %v2432_v10 }
 0x74f   :  { %v1446_v51 = vrot.slane %v1444_v22, 4 }
 0x751   :  { %1513 = vmatmul.mubr.f32.vlgmr.msra.gmra.mrb[12].mxu0 %v1446_v51  ;;  %1584 = vmatmul.mubr.f32.vlgmr.msra.gmra.mrb[20].mxu1 %v1446_v51 }
 0x752   :  { %2297 = vmatpush3.bf16.msra.mxu0 %v2296_v56  ;;  %1828 = vmatprep.mubr.msk.f32.mxu0 %vm2529_vm1, %v2527_v0 }
 0x753   :  { %2298 = vmatprep.subr.bf16.mxu0 %v2528_v17 }
 0x756   :  { %2300 = vmatpush3.bf16.msra.mxu0 %v2299_v6 }
 0x757   :  { %2301 = vmatprep.subr.bf16.mxu0 %v2528_v17 }
 0x75a   :  { %2303 = vmatpush3.bf16.msra.mxu0 %v2302_v9 }
 0x75b   :  { %2304 = vmatprep.subr.bf16.mxu0 %v2528_v17 }
 0x75e   :  { %2306 = vmatpush3.bf16.msra.mxu0 %v2305_v14 }
 0x75f   :  { %2307 = vmatprep.subr.bf16.mxu0 %v2528_v17 }
 0x762   :  { %2309 = vmatpush3.bf16.msra.mxu0 %v2308_v31 }
 0x763   :  { %2310 = vmatprep.subr.bf16.mxu0 %v2528_v17 }
 0x766   :  { %2312 = vmatpush3.bf16.msra.mxu0 %v2311_v48 }
 0x767   :  { %2313 = vmatprep.subr.bf16.mxu0 %v2528_v17 }
 0x76a   :  { %2315 = vmatpush3.bf16.msra.mxu0 %v2314_v27 }
 0x76b   :  { %2316 = vmatprep.subr.bf16.mxu0 %v2528_v17 }
 0x76e   :  { %2318 = vmatpush3.bf16.msra.mxu0 %v2317_v32 }
 0x824   :  { %v1514_v37 = vpop.f32.mrb[12].mxu0  ;;  %v1585_v39 = vpop.f32.mrb[20].mxu1 }
 0x825   :  { %v1594_v35 = vrot.slane %v1514_v37, 2  ;;  %v1516_v38 = vpop.f32.mrb[13].mxu0  ;;  %v1587_v0 = vpop.f32.mrb[21].mxu1  ;;  %v1596_v58 = vrot.slane %v1585_v39, 2 }
 0x826   :  { %v1595_v42 = vrot.slane %v1516_v38, 2  ;;  %v1597_v59 = vrot.slane %v1587_v0, 2 }
 0x827   :  { %v1602_v46 = vadd.f32 %v1594_v35, %v2719_v33  ;;  %v1604_v62 = vadd.f32 %v1596_v58, %v2729_v60 }
 0x828   :  { %v1603_v47 = vadd.f32 %v1595_v42, %v2722_v44  ;;  %v1605_v3 = vadd.f32 %v1597_v59, %v2731_v2 }
 0x829   :  { %v1775_v50 = vmul.f32 -1.442695, %v1602_v46  ;;  %v1777_v7 = vmul.f32 -1.442695, %v1604_v62 }
 0x82a   :  { %v1776_v54 = vmul.f32 -1.442695, %v1603_v47 }
 0x82b   :  { %2435 = vpow2.f32 %v1775_v50 }
 0x82c   :  { %2437 = vpow2.f32 %v1776_v54 }
 0x82d   :  { %2439 = vtanh.f32 %v1605_v3 }
 0x82e   :  { %2441 = vpow2.f32 %v1777_v7 }
 0x835   :  { %v2436_v8 = vpop.eup %2435 }
 0x836   :  { %v1615_v11 = vadd.f32 1.0, %v2436_v8  ;;  %v2438_v15 = vpop.eup %2437 }
 0x837   :  { %v1616_v33 = vadd.f32 1.0, %v2438_v15  ;;  %v2440_v44 = vpop.eup %2439 }
 0x838   :  { %2443 = vrcp.f32 %v1615_v11  ;;  %v2442_v19 = vpop.eup %2441 }
 0x839   :  { %2445 = vrcp.f32 %v1616_v33  ;;  %v1617_v36 = vadd.f32 1.0, %v2442_v19 }
 0x83b   :  { %2447 = vrcp.f32 %v1617_v36 }
 0x842   :  { %v2444_v20 = vpop.eup %2443 }
 0x843   :  { %v1629_v28 = vmul.f32 %v2444_v20, %v2440_v44  ;;  %v2446_v29 = vpop.eup %2445 }
 0x844   :  { %v1628_v60 = vmul.f32 %v2446_v29, %v1626_v24 }
 0x845   :  { %v2448_v2 = vpop.eup %2447 }
 0x846   :  { %v1630_v41 = vadd.f32 %v1629_v28, %v1628_v60 }
 0x848   :  { %2449 = vtanh.f32 %v1630_v41 }
 0x852   :  { %v2450_v43 = vpop.eup %2449 }
 0x853   :  { %v1632_v49 = vmul.f32 %v2450_v43, %v2448_v2 }
 0x855   :  { %1633 = vst [vmem:[%s3069_s6 - $0x6] sm:$0xc0] %v1632_v49  ;;  %v1658_v55 = vrot.slane %v1632_v49, 6 }
 0x857   :  { %1829 = vmatmul.mubr.f32.vlgmr.msra.gmra.mrb[14].mxu0 %v1658_v55 }
 0x92a   :  { %v1726_v63 = vpop.f32.mrb[14].mxu0 }
 0x92b   :  { %v1727_v5 = vadd.f32 %v1778_v61, %v1726_v63  ;;  %v1830_v10 = vpop.f32.mrb[15].mxu0 }
 0x92d   :  { %1730 = vst [vmem:[#allocation7] sm:$0x3] %v1727_v5 }
 0x92e   :  { %2506 = shalt.err (!%p2503_p6)
}
 0x92f   :  { %s2507_s18 = scalar_lea.hbm %s3070_s7, 32 }
 0x930   :  { %p2508_p7 = scmp.ne.s32.totalorder %s3070_s7, %s2507_s18  ;;  %p2511_p8 = scmp.lt.u32.totalorder %s2507_s18, %s3070_s7 }
 0x932   :  { %p2513_p9 = pnand %p2511_p8, %p2508_p7 }
 0x934   :  { %2516 = shalt.err (!%p2513_p9)
}
 0x935   :  { %1742 = dma.vmem_to_hbm [thread:$0]  %s1740_s15, 32, %s3070_s7, [#allocation4]  }
 0x936   :  { %2521 = dma.done.wait [#allocation4], 32  }
 0x937   :  { %2522 = vsyncadd [#allocation4], 4294967264 }
 0x938   :  { %1748 = vsyncpa [#allocation3], 1 }
 0x939   :  { %1749 = vsyncpa [#allocation6], 1 }
 0x93a   :  { %1750 = vsyncpa [#allocation4], 1 }

</bundles_post_ra>
